<compile_context>
chip_gen: v6e
topology: v6e:2x2x1
jax: 0.10.0
libtpu: 0.0.40
codegen_flags: <defaults>
</compile_context>

<pallas_src>
from functools import partial

import jax
import jax.numpy as jnp
from jax import lax
from jax.experimental import pallas as pl
from jax.experimental.pallas import tpu as pltpu

_MIB = 1024 * 1024


def _vmem_limit_bytes():
    """Per-generation scoped-VMEM limit (v7x -> 32 MiB, v5e/v6e -> 64 MiB)."""
    try:
        phys = int(pltpu.get_tpu_info().vmem_capacity_bytes)
    except Exception:
        phys = 64 * _MIB
    return int(min(max(phys // 2, 16 * _MIB), 64 * _MIB))


def _pm_fused_kernel(x_ref, w_ref, sb_ref, o_ref, *, eps):
    """Fused 2x2 gather + LayerNorm + reduction.

    x_ref : (tm, 2, W2, 2C)  raw input block; dim1 = h-parity, w-parity folded
                             into the channel dim by a free wrapper reshape.
    w_ref : (4C, 2Cout)      gamma-folded W^T, rows permuted to [x0|x2|x1|x3].
    sb_ref: (2, 2Cout) f32   row0 = column sums of w_ref, row1 = beta @ W^T.
    o_ref : (tm*W2, 2Cout)
    """
    tm, _, w2, two_c = x_ref.shape
    tn = tm * w2

    # H-parity slabs (leading-dim index) + sublane-aligned collapse
    # (W2 % pack == 0 is guaranteed by the wrapper, so no relayout).
    a0 = x_ref[:, 0, :, :].reshape(tn, two_c)   # channels: [x0 | x2]
    a1 = x_ref[:, 1, :, :].reshape(tn, two_c)   # channels: [x1 | x3]

    # Single-pass LayerNorm statistics over all 4C channels (f32).
    a0f = a0.astype(jnp.float32)
    a1f = a1.astype(jnp.float32)
    inv_nch = 1.0 / (2.0 * two_c)
    s = jnp.sum(a0f, axis=-1, keepdims=True) + jnp.sum(a1f, axis=-1, keepdims=True)
    ss = (jnp.sum(a0f * a0f, axis=-1, keepdims=True)
          + jnp.sum(a1f * a1f, axis=-1, keepdims=True))
    mu = s * inv_nch
    var = ss * inv_nch - mu * mu
    inv_sigma = lax.rsqrt(var + eps)

    # Two MXU matmuls on raw tokens (native-dtype operands, f32 accumulation).
    y = jnp.dot(a0, w_ref[0:two_c, :], preferred_element_type=jnp.float32)
    y = y + jnp.dot(a1, w_ref[two_c:, :], preferred_element_type=jnp.float32)

    colsum = sb_ref[0:1, :]
    bias = sb_ref[1:2, :]
    o_ref[...] = ((y - mu * colsum) * inv_sigma + bias).astype(o_ref.dtype)


def _pm_tokens_kernel(x_ref, w_ref, sb_ref, o_ref, *, eps):
    """Fallback path: tokens already gathered to (TN, 4C) by the wrapper."""
    x = x_ref[...]
    xf = x.astype(jnp.float32)
    inv_nch = 1.0 / x.shape[-1]
    s = jnp.sum(xf, axis=-1, keepdims=True)
    ss = jnp.sum(xf * xf, axis=-1, keepdims=True)
    mu = s * inv_nch
    var = ss * inv_nch - mu * mu
    inv_sigma = lax.rsqrt(var + eps)
    y = jnp.dot(x, w_ref[...], preferred_element_type=jnp.float32)
    o_ref[...] = ((y - mu * sb_ref[0:1, :]) * inv_sigma
                  + sb_ref[1:2, :]).astype(o_ref.dtype)


def patch_merging(x, w_reduction, gamma, beta, *, eps=1e-5, tile_rows=None):
    """x: (B, D, H, W, C) -> (B, D, ceil(H/2), ceil(W/2), 2C)."""
    B, D, H, W, C = x.shape
    assert w_reduction.shape == (2 * C, 4 * C)
    assert gamma.shape == (4 * C,) and beta.shape == (4 * C,)

    # F.pad(x, (0, 0, 0, W % 2, 0, H % 2)): zero-pad W then H on the high side.
    pad_h, pad_w = H % 2, W % 2
    if pad_h or pad_w:
        x = jnp.pad(x, ((0, 0), (0, 0), (0, pad_h), (0, pad_w), (0, 0)))
    H2, W2 = (H + pad_h) // 2, (W + pad_w) // 2
    N = B * D * H2 * W2

    itemsize = jnp.dtype(x.dtype).itemsize
    pack = max(8, 32 // itemsize)           # sublane rows/tile: f32 8, bf16 16, int8 32

    # Fold LayerNorm gamma into the pre-transposed reduction weight (f32 master).
    wt = w_reduction.astype(jnp.float32).T                    # (4C, 2C)
    wg = wt * gamma.astype(jnp.float32)[:, None]
    bias = (beta.astype(jnp.float32) @ wt)[None, :]           # (1, 2C) f32

    vmem_limit = _vmem_limit_bytes()
    budget = int(vmem_limit * 0.7)
    fixed = 2 * (4 * C) * (2 * C) * itemsize + 4096           # weight double buffer
    cparams = pltpu.CompilerParams(
        dimension_semantics=("parallel",), vmem_limit_bytes=vmem_limit)

    if W2 % pack == 0:
        # ---- fused-gather path: kernel DMAs the raw (padded) input directly ----
        BDH2 = B * D * H2
        # Free reshape of the contiguous NDHWC buffer: (B*D*H2, h-parity, W2, 2C).
        xr = x.reshape(BDH2, 2, W2, 2 * C)
        # Permute weight rows to match [x0|x2] (h-even) and [x1|x3] (h-odd) halves.
        w_perm = jnp.concatenate(
            [wg[0:C], wg[2 * C:3 * C], wg[C:2 * C], wg[3 * C:]], axis=0)
        w_fold = w_perm.astype(x.dtype)
        colsum = jnp.sum(w_fold.astype(jnp.float32), axis=0, keepdims=True)
        sb = jnp.concatenate([colsum, bias], axis=0)          # (2, 2C) f32

        # VMEM-honest tile sizing (double-buffered in/out + f32 temporaries).
        in_row = 2 * W2 * 2 * C * itemsize
        out_row = W2 * 2 * C * itemsize
        tmp_row = W2 * 8 * C * 4
        cap = max(1, (budget - fixed) // (2 * (in_row + out_row) + tmp_row))
        tm = tile_rows if tile_rows is not None else min(cap, max(1, 4096 // W2))
        tm = int(max(1, min(tm, BDH2)))

        out = pl.pallas_call(
            partial(_pm_fused_kernel, eps=eps),
            out_shape=jax.ShapeDtypeStruct((N, 2 * C), x.dtype),
            grid_spec=pltpu.PrefetchScalarGridSpec(
                num_scalar_prefetch=0,
                grid=(pl.cdiv(BDH2, tm),),
                in_specs=[
                    pl.BlockSpec((tm, 2, W2, 2 * C), lambda i: (i, 0, 0, 0)),
                    pl.BlockSpec((4 * C, 2 * C), lambda i: (0, 0)),
                    pl.BlockSpec((2, 2 * C), lambda i: (0, 0)),
                ],
                out_specs=pl.BlockSpec((tm * W2, 2 * C), lambda i: (i, 0)),
            ),
            compiler_params=cparams,
        )(xr, w_fold, sb)
    else:
        # ---- fallback: XLA gathers tokens to (N, 4C); single-matmul kernel ----
        # TODO(synk): fold the gather in for sublane-unaligned W2 (strided sublane DMA).
        x0 = x[:, :, 0::2, 0::2, :]
        x1 = x[:, :, 1::2, 0::2, :]
        x2 = x[:, :, 0::2, 1::2, :]
        x3 = x[:, :, 1::2, 1::2, :]
        tokens = jnp.concatenate([x0, x1, x2, x3], axis=-1).reshape(N, 4 * C)
        w_fold = wg.astype(x.dtype)
        colsum = jnp.sum(w_fold.astype(jnp.float32), axis=0, keepdims=True)
        sb = jnp.concatenate([colsum, bias], axis=0)

        per_row = 2 * (4 * C + 2 * C) * itemsize + 8 * C * 4
        cap = max(pack, (budget - fixed) // per_row)
        tile = max(pack, (min(cap, 2048) // pack) * pack)
        tile_n = N if tile >= N else int(tile)

        out = pl.pallas_call(
            partial(_pm_tokens_kernel, eps=eps),
            out_shape=jax.ShapeDtypeStruct((N, 2 * C), x.dtype),
            grid_spec=pltpu.PrefetchScalarGridSpec(
                num_scalar_prefetch=0,
                grid=(pl.cdiv(N, tile_n),),
                in_specs=[
                    pl.BlockSpec((tile_n, 4 * C), lambda i: (i, 0)),
                    pl.BlockSpec((4 * C, 2 * C), lambda i: (0, 0)),
                    pl.BlockSpec((2, 2 * C), lambda i: (0, 0)),
                ],
                out_specs=pl.BlockSpec((tile_n, 2 * C), lambda i: (i, 0)),
            ),
            compiler_params=cparams,
        )(tokens, w_fold, sb)

    return out.reshape(B, D, H2, W2, 2 * C)


def _reference(x, w_reduction, gamma, beta, eps=1e-5):
    """Pure-JAX mirror of the PyTorch forward, for verification."""
    B, D, H, W, C = x.shape
    x = jnp.pad(x, ((0, 0), (0, 0), (0, H % 2), (0, W % 2), (0, 0)))
    x0 = x[:, :, 0::2, 0::2, :]
    x1 = x[:, :, 1::2, 0::2, :]
    x2 = x[:, :, 0::2, 1::2, :]
    x3 = x[:, :, 1::2, 1::2, :]
    xc = jnp.concatenate([x0, x1, x2, x3], axis=-1)
    mu = xc.mean(-1, keepdims=True)
    var = ((xc - mu) ** 2).mean(-1, keepdims=True)
    xn = (xc - mu) / jnp.sqrt(var + eps) * gamma + beta
    return jnp.einsum("...k,ok->...o", xn, w_reduction)


if __name__ == "__main__":
    key = jax.random.PRNGKey(0)
    k1, k2, k3, k4, k5 = jax.random.split(key, 5)

    # C=64 -> norm dim 4C=256, output 2C=128 (lane-dense); W=16 -> W2=8 (fused path).
    B, D, H, W, C = 2, 2, 16, 16, 64
    x = jax.random.normal(k1, (B, D, H, W, C), dtype=jnp.float32)
    w_reduction = jax.random.normal(k2, (2 * C, 4 * C), dtype=jnp.float32) * 0.05
    gamma = 1.0 + 0.1 * jax.random.normal(k3, (4 * C,), dtype=jnp.float32)
    beta = 0.1 * jax.random.normal(k4, (4 * C,), dtype=jnp.float32)

    # 1) fused-gather path.
    out = jax.block_until_ready(patch_merging(x, w_reduction, gamma, beta))
    assert out.shape == (B, D, H // 2, W // 2, 2 * C), out.shape
    ref = _reference(x, w_reduction, gamma, beta)
    assert jnp.allclose(out, ref, atol=2e-4, rtol=2e-4), "mismatch (fused path)"

    # 2) masked boundary blocks on the fused path (tile_rows does not divide B*D*H2).
    out_b = jax.block_until_ready(
        patch_merging(x, w_reduction, gamma, beta, tile_rows=24))
    assert jnp.allclose(out_b, ref, atol=2e-4, rtol=2e-4), "mismatch (masked boundary)"

    # 3) odd H/W -> zero-pad path, W2=3 not sublane-aligned -> fallback kernel.
    x_odd = jax.random.normal(k5, (B, D, 7, 5, C), dtype=jnp.float32)
    out_odd = jax.block_until_ready(patch_merging(x_odd, w_reduction, gamma, beta))
    assert out_odd.shape == (B, D, 4, 3, 2 * C), out_odd.shape
    ref_odd = _reference(x_odd, w_reduction, gamma, beta)
    assert jnp.allclose(out_odd, ref_odd, atol=2e-4, rtol=2e-4), "mismatch (odd pad)"

    print("KERNEL_OK")
</pallas_src>

<mosaic_0001>
module attributes {stable_mosaic.version = 11 : i64} {
  func.func @_pm_fused_kernel(%arg0: i32, %arg1: memref<32x2x8x128xf32, #tpu.memory_space<vmem>>, %arg2: memref<256x128xf32, #tpu.memory_space<vmem>>, %arg3: memref<2x128xf32, #tpu.memory_space<vmem>>, %arg4: memref<256x128xf32, #tpu.memory_space<vmem>>) attributes {dimension_semantics = [#tpu.dimension_semantics<parallel>], iteration_bounds = array<i64: 1>, scalar_prefetch = 0 : i64, scratch_operands = 0 : i64, tpu.core_type = #tpu.core_type<tc>, window_params = [{transform_indices = @transform_0, window_bounds = array<i64: 32, 2, 8, 128>}, {pipeline_mode = #tpu.pipeline_mode<synchronous>, transform_indices = @transform_1, window_bounds = array<i64: 256, 128>}, {pipeline_mode = #tpu.pipeline_mode<synchronous>, transform_indices = @transform_2, window_bounds = array<i64: 2, 128>}, {transform_indices = @transform_3, window_bounds = array<i64: 256, 128>}]} {
    %c0 = arith.constant 0 : index
    %c0_0 = arith.constant 0 : index
    %c0_1 = arith.constant 0 : index
    %c0_2 = arith.constant 0 : index
    %0 = vector.load %arg1[%c0, %c0_0, %c0_1, %c0_2] : memref<32x2x8x128xf32, #tpu.memory_space<vmem>>, vector<32x1x8x128xf32>
    %1 = vector.shape_cast %0 : vector<32x1x8x128xf32> to vector<32x8x128xf32>
    %2 = vector.shape_cast %1 : vector<32x8x128xf32> to vector<256x128xf32>
    %c0_3 = arith.constant 0 : index
    %c1 = arith.constant 1 : index
    %c0_4 = arith.constant 0 : index
    %c0_5 = arith.constant 0 : index
    %3 = vector.load %arg1[%c0_3, %c1, %c0_4, %c0_5] : memref<32x2x8x128xf32, #tpu.memory_space<vmem>>, vector<32x1x8x128xf32>
    %4 = vector.shape_cast %3 : vector<32x1x8x128xf32> to vector<32x8x128xf32>
    %5 = vector.shape_cast %4 : vector<32x8x128xf32> to vector<256x128xf32>
    %cst = arith.constant dense<0.000000e+00> : vector<256xf32>
    %6 = vector.multi_reduction <add>, %2, %cst [1] : vector<256x128xf32> to vector<256xf32>
    %7 = vector.shape_cast %6 : vector<256xf32> to vector<256x1xf32>
    %cst_6 = arith.constant dense<0.000000e+00> : vector<256xf32>
    %8 = vector.multi_reduction <add>, %5, %cst_6 [1] : vector<256x128xf32> to vector<256xf32>
    %9 = vector.shape_cast %8 : vector<256xf32> to vector<256x1xf32>
    %10 = arith.addf %7, %9 : vector<256x1xf32>
    %11 = arith.mulf %2, %2 : vector<256x128xf32>
    %cst_7 = arith.constant dense<0.000000e+00> : vector<256xf32>
    %12 = vector.multi_reduction <add>, %11, %cst_7 [1] : vector<256x128xf32> to vector<256xf32>
    %13 = vector.shape_cast %12 : vector<256xf32> to vector<256x1xf32>
    %14 = arith.mulf %5, %5 : vector<256x128xf32>
    %cst_8 = arith.constant dense<0.000000e+00> : vector<256xf32>
    %15 = vector.multi_reduction <add>, %14, %cst_8 [1] : vector<256x128xf32> to vector<256xf32>
    %16 = vector.shape_cast %15 : vector<256xf32> to vector<256x1xf32>
    %17 = arith.addf %13, %16 : vector<256x1xf32>
    %cst_9 = arith.constant 3.906250e-03 : f32
    %18 = vector.broadcast %cst_9 : f32 to vector<256x1xf32>
    %19 = arith.mulf %10, %18 : vector<256x1xf32>
    %cst_10 = arith.constant 3.906250e-03 : f32
    %20 = vector.broadcast %cst_10 : f32 to vector<256x1xf32>
    %21 = arith.mulf %17, %20 : vector<256x1xf32>
    %22 = arith.mulf %19, %19 : vector<256x1xf32>
    %23 = arith.subf %21, %22 : vector<256x1xf32>
    %cst_11 = arith.constant 9.99999974E-6 : f32
    %24 = vector.broadcast %cst_11 : f32 to vector<256x1xf32>
    %25 = arith.addf %23, %24 : vector<256x1xf32>
    %26 = math.rsqrt %25 : vector<256x1xf32>
    %c0_12 = arith.constant 0 : index
    %c0_13 = arith.constant 0 : index
    %27 = vector.load %arg2[%c0_12, %c0_13] : memref<256x128xf32, #tpu.memory_space<vmem>>, vector<128x128xf32>
    %cst_14 = arith.constant dense<0.000000e+00> : vector<256x128xf32>
    %28 = tpu.matmul %2, %27, %cst_14 {dimension_numbers = #tpu.dot_dimension_numbers<[1], [0], [0], [1], [0, 0, 1, 1], [], []>} : vector<256x128xf32>, vector<128x128xf32>, vector<256x128xf32> -> vector<256x128xf32>
    %c128 = arith.constant 128 : index
    %c0_15 = arith.constant 0 : index
    %29 = vector.load %arg2[%c128, %c0_15] : memref<256x128xf32, #tpu.memory_space<vmem>>, vector<128x128xf32>
    %cst_16 = arith.constant dense<0.000000e+00> : vector<256x128xf32>
    %30 = tpu.matmul %5, %29, %cst_16 {dimension_numbers = #tpu.dot_dimension_numbers<[1], [0], [0], [1], [0, 0, 1, 1], [], []>} : vector<256x128xf32>, vector<128x128xf32>, vector<256x128xf32> -> vector<256x128xf32>
    %31 = arith.addf %28, %30 : vector<256x128xf32>
    %c0_17 = arith.constant 0 : index
    %c0_18 = arith.constant 0 : index
    %32 = vector.load %arg3[%c0_17, %c0_18] : memref<2x128xf32, #tpu.memory_space<vmem>>, vector<1x128xf32>
    %c1_19 = arith.constant 1 : index
    %c0_20 = arith.constant 0 : index
    %33 = vector.load %arg3[%c1_19, %c0_20] : memref<2x128xf32, #tpu.memory_space<vmem>>, vector<1x128xf32>
    %34 = vector.broadcast %19 : vector<256x1xf32> to vector<256x128xf32>
    %35 = vector.broadcast %32 : vector<1x128xf32> to vector<256x128xf32>
    %36 = arith.mulf %34, %35 : vector<256x128xf32>
    %37 = arith.subf %31, %36 : vector<256x128xf32>
    %38 = vector.broadcast %26 : vector<256x1xf32> to vector<256x128xf32>
    %39 = arith.mulf %37, %38 : vector<256x128xf32>
    %40 = vector.broadcast %33 : vector<1x128xf32> to vector<256x128xf32>
    %41 = arith.addf %39, %40 : vector<256x128xf32>
    %c0_21 = arith.constant 0 : index
    %c0_22 = arith.constant 0 : index
    %42 = vector.load %arg4[%c0_21, %c0_22] : memref<256x128xf32, #tpu.memory_space<vmem>>, vector<256x128xf32>
    tpu.vector_store %arg4[%c0_21, %c0_22], %41 {strides = array<i32>} : memref<256x128xf32, #tpu.memory_space<vmem>>, vector<256x128xf32>,
    return
  }
  func.func @transform_0(%arg0: i32) -> (i32, i32, i32, i32) {
    %c0_i32 = arith.constant 0 : i32
    %c0_i32_0 = arith.constant 0 : i32
    %c0_i32_1 = arith.constant 0 : i32
    %c0_i32_2 = arith.constant 0 : i32
    return %arg0, %c0_i32, %c0_i32_0, %c0_i32_1 : i32, i32, i32, i32
  }
  func.func @transform_1(%arg0: i32) -> (i32, i32) {
    %c0_i32 = arith.constant 0 : i32
    %c0_i32_0 = arith.constant 0 : i32
    %c0_i32_1 = arith.constant 0 : i32
    return %c0_i32, %c0_i32_0 : i32, i32
  }
  func.func @transform_2(%arg0: i32) -> (i32, i32) {
    %c0_i32 = arith.constant 0 : i32
    %c0_i32_0 = arith.constant 0 : i32
    %c0_i32_1 = arith.constant 0 : i32
    return %c0_i32, %c0_i32_0 : i32, i32
  }
  func.func @transform_3(%arg0: i32) -> (i32, i32) {
    %c0_i32 = arith.constant 0 : i32
    %c0_i32_0 = arith.constant 0 : i32
    return %arg0, %c0_i32 : i32, i32
  }
}

</mosaic_0001>

<bundles_post_ra>
// kernel: tpu_custom_call.1
= control target key start
LH: loop header
LB: loop body
LE: loop exit
PB: predicated region body
PF: predicated region fallthrough
CT: control target
= control target key end

     0   :  { %8 = vsyncpa [#allocation3], 0  ;;  %s2974_s0 = inlined_call_operand.hbm [shape: f32[32,2,8,128], index: 0, kind: input, shape index: {}]   ;;  %s2975_s1 = inlined_call_operand.hbm [shape: f32[256,128], index: 1, kind: input, shape index: {}]   ;;  %s2976_s2 = inlined_call_operand.vmem [shape: f32[2,128], index: 2, kind: input, shape index: {}]   ;;  %s2977_s3 = inlined_call_operand.hbm [shape: f32[256,128], index: 3, kind: output, shape index: {}]  }
   0x1   :  { %9 = vsyncpa [#allocation6], 0 }
   0x2   :  { %10 = vsyncpa [#allocation4], 0  ;;  %s1748_s12 = smov [#allocation2]  }
   0x3   :  { %s16_s13 = sshll.u32 %s1748_s12, 4  ;;  %s17_s13 = int_to_ptr.vmem [resolvable:$true] %s16_s13 }
   0x4   :  { %s1690_s14 = scalar_lea.vmem %s17_s13, 8192  ;;  %p1695_p1 = scmp.lt.s32.totalorder %s17_s13, %s17_s13 }
   0x5   :  { %p1691_p0 = scmp.ne.s32.totalorder %s17_s13, %s1690_s14  ;;  %p1696_p2 = scmp.lt.s32.totalorder %s1690_s14, %s1690_s14 }
   0x7   :  { %p1697_p3 = por %p1696_p2, %p1695_p1 }
   0x9   :  { %p1698_p4 = pnand %p1697_p3, %p1691_p0 }
   0xb   :  { %1701 = shalt.err (!%p1698_p4)
}
   0xc   :  { %s1749_s15 = smov 128   ;;  %s1750_s16 = smov 8  }
   0xd   :  { %22 = dma.hbm_to_vmem [thread:$0]  %s2974_s0, 8192, %s17_s13, [#allocation3], %s1749_s15, %s1749_s15, %s1750_s16  }
   0xe   :  { %s1751_s19 = smov [#allocation5]  }
   0xf   :  { %s28_s20 = sshll.u32 %s1751_s19, 4  ;;  %s29_s20 = int_to_ptr.vmem [resolvable:$true] %s28_s20 }
  0x10   :  { %s1710_s21 = scalar_lea.vmem %s29_s20, 4096  ;;  %p1715_p6 = scmp.lt.s32.totalorder %s29_s20, %s29_s20 }
  0x11   :  { %p1711_p5 = scmp.ne.s32.totalorder %s29_s20, %s1710_s21  ;;  %p1716_p7 = scmp.lt.s32.totalorder %s1710_s21, %s1710_s21 }
  0x13   :  { %p1717_p8 = por %p1716_p7, %p1715_p6 }
  0x15   :  { %p1718_p9 = pnand %p1717_p8, %p1711_p5 }
  0x17   :  { %1721 = shalt.err (!%p1718_p9)
}
  0x18   :  { %34 = dma.hbm_to_vmem [thread:$0]  %s2975_s1, 4096, %s29_s20, [#allocation6], %s1749_s15, %s1749_s15, %s1750_s16  }
  0x19   :  { %1742 = dma.done.wait [#allocation3], 8192  }
  0x1a   :  { %1743 = vsyncadd [#allocation3], 4294959104 }
  0x1b   :  { %1744 = dma.done.wait [#allocation6], 4096  }
  0x1c   :  { %1745 = vsyncadd [#allocation6], 4294963200  ;;  %v715_v0 = vld [vmem:[#allocation5 + $0xf8] sm:$0xff]  ;;  %v1785_v2 = vld [vmem:[#allocation2 + $0x20] sm:$0xff]  ;;  %s1752_s28 = smov [#allocation7]  }
  0x1d   :  { %v699_v1 = vld [vmem:[#allocation5 + $0x78] sm:$0xff]  ;;  %1452 = vmatprep.subr.mxu0 %v715_v0  ;;  %v1787_v3 = vld [vmem:[#allocation2] sm:$0xff]  ;;  %v714_v4 = vld [vmem:[#allocation5 + $0xf0] sm:$0xff]  ;;  %112 = vadd.xlane.f32.xlu1 %v1785_v2 }
  0x1e   :  { %1532 = vmatprep.subr.mxu1 %v699_v1  ;;  %v698_v5 = vld [vmem:[#allocation5 + $0x70] sm:$0xff]  ;;  %108 = vadd.xlane.f32.xlu0 %v1787_v3  ;;  %v713_v6 = vld [vmem:[#allocation5 + $0xe8] sm:$0xff]  ;;  %v712_v10 = vld [vmem:[#allocation5 + $0xe0] sm:$0xff] }
  0x1f   :  { %1453 = vmatpush3.msra.mxu0 %v715_v0  ;;  %1533 = vmatpush3.msra.mxu1 %v699_v1  ;;  %v697_v7 = vld [vmem:[#allocation5 + $0x68] sm:$0xff]  ;;  %v1791_v8 = vld [vmem:[#allocation2 + $0x30] sm:$0xff]  ;;  %v696_v11 = vld [vmem:[#allocation5 + $0x60] sm:$0xff] }
  0x20   :  { %1454 = vmatprep.subr.mxu0 %v714_v4  ;;  %1534 = vmatprep.subr.mxu1 %v698_v5  ;;  %v1793_v9 = vld [vmem:[#allocation2 + $0x10] sm:$0xff]  ;;  %v711_v12 = vld [vmem:[#allocation5 + $0xd8] sm:$0xff]  ;;  %v1799_v15 = vld [vmem:[#allocation2 + $0x40] sm:$0xff] }
  0x21   :  { %1455 = vmatpush3.msra.mxu0 %v714_v4  ;;  %1535 = vmatpush3.msra.mxu1 %v698_v5  ;;  %v695_v13 = vld [vmem:[#allocation5 + $0x58] sm:$0xff]  ;;  %v1797_v14 = vld [vmem:[#allocation2 + $0x50] sm:$0xff]  ;;  %v709_v18 = vld [vmem:[#allocation5 + $0xc8] sm:$0xff] }
  0x22   :  { %1456 = vmatprep.subr.mxu0 %v713_v6  ;;  %1536 = vmatprep.subr.mxu1 %v697_v7  ;;  %v710_v16 = vld [vmem:[#allocation5 + $0xd0] sm:$0xff]  ;;  %v693_v19 = vld [vmem:[#allocation5 + $0x48] sm:$0xff]  ;;  %v1805_v21 = vld [vmem:[#allocation2 + $0x60] sm:$0xff] }
  0x23   :  { %114 = vadd.xlane.f32.xlu1 %v1791_v8  ;;  %110 = vadd.xlane.f32.xlu0 %v1793_v9  ;;  %v694_v17 = vld [vmem:[#allocation5 + $0x50] sm:$0xff]  ;;  %v708_v22 = vld [vmem:[#allocation5 + $0xc0] sm:$0xff]  ;;  %v707_v24 = vld [vmem:[#allocation5 + $0xb8] sm:$0xff] }
  0x24   :  { %1457 = vmatpush3.msra.mxu0 %v713_v6  ;;  %1537 = vmatpush3.msra.mxu1 %v697_v7  ;;  %v1803_v20 = vld [vmem:[#allocation2 + $0x70] sm:$0xff]  ;;  %v692_v23 = vld [vmem:[#allocation5 + $0x40] sm:$0xff]  ;;  %v691_v25 = vld [vmem:[#allocation5 + $0x38] sm:$0xff] }
  0x25   :  { %1458 = vmatprep.subr.mxu0 %v712_v10  ;;  %1538 = vmatprep.subr.mxu1 %v696_v11  ;;  %v1809_v26 = vld [vmem:[#allocation2 + $0x90] sm:$0xff]  ;;  %v1811_v27 = vld [vmem:[#allocation2 + $0x80] sm:$0xff]  ;;  %v705_v30 = vld [vmem:[#allocation5 + $0xa8] sm:$0xff] }
  0x26   :  { %1459 = vmatpush3.msra.mxu0 %v712_v10  ;;  %1539 = vmatpush3.msra.mxu1 %v696_v11  ;;  %v706_v28 = vld [vmem:[#allocation5 + $0xb0] sm:$0xff]  ;;  %v689_v31 = vld [vmem:[#allocation5 + $0x28] sm:$0xff]  ;;  %v1817_v33 = vld [vmem:[#allocation2 + $0xa0] sm:$0xff] }
  0x27   :  { %1460 = vmatprep.subr.mxu0 %v711_v12  ;;  %1540 = vmatprep.subr.mxu1 %v695_v13  ;;  %v690_v29 = vld [vmem:[#allocation5 + $0x30] sm:$0xff]  ;;  %v704_v34 = vld [vmem:[#allocation5 + $0xa0] sm:$0xff]  ;;  %v703_v36 = vld [vmem:[#allocation5 + $0x98] sm:$0xff] }
  0x28   :  { %118 = vadd.xlane.f32.xlu1 %v1797_v14  ;;  %116 = vadd.xlane.f32.xlu0 %v1799_v15  ;;  %v1815_v32 = vld [vmem:[#allocation2 + $0xb0] sm:$0xff]  ;;  %v688_v35 = vld [vmem:[#allocation5 + $0x20] sm:$0xff]  ;;  %v687_v37 = vld [vmem:[#allocation5 + $0x18] sm:$0xff] }
  0x29   :  { %1461 = vmatpush3.msra.mxu0 %v711_v12  ;;  %1541 = vmatpush3.msra.mxu1 %v695_v13  ;;  %v1821_v38 = vld [vmem:[#allocation2 + $0xd0] sm:$0xff]  ;;  %v1823_v39 = vld [vmem:[#allocation2 + $0xc0] sm:$0xff]  ;;  %v701_v42 = vld [vmem:[#allocation5 + $0x88] sm:$0xff] }
  0x2a   :  { %1462 = vmatprep.subr.mxu0 %v710_v16  ;;  %1542 = vmatprep.subr.mxu1 %v694_v17  ;;  %v702_v40 = vld [vmem:[#allocation5 + $0x90] sm:$0xff]  ;;  %v685_v43 = vld [vmem:[#allocation5 + $0x8] sm:$0xff]  ;;  %v1829_v45 = vld [vmem:[#allocation2 + $0xe0] sm:$0xff] }
  0x2b   :  { %1463 = vmatpush3.msra.mxu0 %v710_v16  ;;  %1543 = vmatpush3.msra.mxu1 %v694_v17  ;;  %v686_v41 = vld [vmem:[#allocation5 + $0x10] sm:$0xff]  ;;  %v700_v46 = vld [vmem:[#allocation5 + $0x80] sm:$0xff]  ;;  %v1833_v48 = vld [vmem:[#allocation2 + $0x8] sm:$0xff] }
  0x2c   :  { %1464 = vmatprep.subr.mxu0 %v709_v18  ;;  %1544 = vmatprep.subr.mxu1 %v693_v19  ;;  %v1827_v44 = vld [vmem:[#allocation2 + $0xf0] sm:$0xff]  ;;  %v684_v47 = vld [vmem:[#allocation5] sm:$0xff]  ;;  %v1835_v49 = vld [vmem:[#allocation2 + $0x18] sm:$0xff] }
  0x2d   :  { %122 = vadd.xlane.f32.xlu1 %v1803_v20  ;;  %120 = vadd.xlane.f32.xlu0 %v1805_v21  ;;  %v1837_v50 = vld [vmem:[#allocation2 + $0x110] sm:$0xff]  ;;  %v1840_v51 = vld [vmem:[#allocation2 + $0x100] sm:$0xff]  ;;  %v1843_v52 = vld [vmem:[#allocation2 + $0x28] sm:$0xff] }
  0x2e   :  { %1465 = vmatpush3.msra.mxu0 %v709_v18  ;;  %1545 = vmatpush3.msra.mxu1 %v693_v19  ;;  %v1849_v53 = vld [vmem:[#allocation2 + $0x38] sm:$0xff]  ;;  %v1851_v54 = vld [vmem:[#allocation2 + $0x130] sm:$0xff]  ;;  %v1855_v55 = vld [vmem:[#allocation2 + $0x120] sm:$0xff] }
  0x2f   :  { %1466 = vmatprep.subr.mxu0 %v708_v22  ;;  %1546 = vmatprep.subr.mxu1 %v692_v23  ;;  %v1857_v56 = vld [vmem:[#allocation2 + $0x48] sm:$0xff]  ;;  %v1863_v57 = vld [vmem:[#allocation2 + $0x58] sm:$0xff]  ;;  %v1865_v58 = vld [vmem:[#allocation2 + $0x150] sm:$0xff] }
  0x30   :  { %1467 = vmatpush3.msra.mxu0 %v708_v22  ;;  %1547 = vmatpush3.msra.mxu1 %v692_v23  ;;  %v1869_v59 = vld [vmem:[#allocation2 + $0x140] sm:$0xff]  ;;  %v1871_v60 = vld [vmem:[#allocation2 + $0x68] sm:$0xff]  ;;  %v1877_v61 = vld [vmem:[#allocation2 + $0x78] sm:$0xff] }
  0x31   :  { %1468 = vmatprep.subr.mxu0 %v707_v24  ;;  %1548 = vmatprep.subr.mxu1 %v691_v25  ;;  %v1879_v62 = vld [vmem:[#allocation2 + $0x170] sm:$0xff]  ;;  %v1883_v63 = vld [vmem:[#allocation2 + $0x160] sm:$0xff]  ;;  %v1885_v0 = vld [vmem:[#allocation2 + $0x88] sm:$0xff] }
  0x32   :  { %126 = vadd.xlane.f32.xlu1 %v1809_v26  ;;  %124 = vadd.xlane.f32.xlu0 %v1811_v27  ;;  %v1891_v1 = vld [vmem:[#allocation2 + $0x98] sm:$0xff]  ;;  %v1893_v4 = vld [vmem:[#allocation2 + $0x190] sm:$0xff]  ;;  %v1897_v5 = vld [vmem:[#allocation2 + $0x180] sm:$0xff] }
  0x33   :  { %1469 = vmatpush3.msra.mxu0 %v707_v24  ;;  %1549 = vmatpush3.msra.mxu1 %v691_v25  ;;  %v1899_v6 = vld [vmem:[#allocation2 + $0xa8] sm:$0xff]  ;;  %v1905_v7 = vld [vmem:[#allocation2 + $0xb8] sm:$0xff]  ;;  %v1907_v10 = vld [vmem:[#allocation2 + $0x1b0] sm:$0xff] }
  0x34   :  { %1470 = vmatprep.subr.mxu0 %v706_v28  ;;  %1550 = vmatprep.subr.mxu1 %v690_v29  ;;  %v1911_v11 = vld [vmem:[#allocation2 + $0x1a0] sm:$0xff]  ;;  %v1913_v12 = vld [vmem:[#allocation2 + $0xc8] sm:$0xff]  ;;  %v1919_v13 = vld [vmem:[#allocation2 + $0xd8] sm:$0xff] }
  0x35   :  { %1471 = vmatpush3.msra.mxu0 %v706_v28  ;;  %1551 = vmatpush3.msra.mxu1 %v690_v29  ;;  %v1921_v16 = vld [vmem:[#allocation2 + $0x1d0] sm:$0xff]  ;;  %v1925_v17 = vld [vmem:[#allocation2 + $0x1c0] sm:$0xff]  ;;  %v1927_v18 = vld [vmem:[#allocation2 + $0xe8] sm:$0xff] }
  0x36   :  { %1472 = vmatprep.subr.mxu0 %v705_v30  ;;  %1552 = vmatprep.subr.mxu1 %v689_v31  ;;  %v1933_v19 = vld [vmem:[#allocation2 + $0xf8] sm:$0xff]  ;;  %v1935_v22 = vld [vmem:[#allocation2 + $0x1f0] sm:$0xff]  ;;  %v1939_v23 = vld [vmem:[#allocation2 + $0x1e0] sm:$0xff] }
  0x37   :  { %130 = vadd.xlane.f32.xlu1 %v1815_v32  ;;  %128 = vadd.xlane.f32.xlu0 %v1817_v33  ;;  %v1941_v24 = vld [vmem:[#allocation2 + $0x108] sm:$0xff]  ;;  %v1947_v25 = vld [vmem:[#allocation2 + $0x118] sm:$0xff] }
  0x38   :  { %1473 = vmatpush3.msra.mxu0 %v705_v30  ;;  %1553 = vmatpush3.msra.mxu1 %v689_v31  ;;  %v1951_v28 = vld [vmem:[#allocation2 + $0x128] sm:$0xff]  ;;  %v1957_v29 = vld [vmem:[#allocation2 + $0x138] sm:$0xff] }
  0x39   :  { %1474 = vmatprep.subr.mxu0 %v704_v34  ;;  %1554 = vmatprep.subr.mxu1 %v688_v35  ;;  %v1961_v30 = vld [vmem:[#allocation2 + $0x148] sm:$0xff]  ;;  %v1967_v31 = vld [vmem:[#allocation2 + $0x158] sm:$0xff] }
  0x3a   :  { %1475 = vmatpush3.msra.mxu0 %v704_v34  ;;  %1555 = vmatpush3.msra.mxu1 %v688_v35  ;;  %2996 = vst [vmem:[#allocation11_spill] sm:$0xff] %v1961_v30  ;;  %v1971_v34 = vld [vmem:[#allocation2 + $0x168] sm:$0xff]  ;;  %v1977_v35 = vld [vmem:[#allocation2 + $0x178] sm:$0xff] }
  0x3b   :  { %1476 = vmatprep.subr.mxu0 %v703_v36  ;;  %1556 = vmatprep.subr.mxu1 %v687_v37 }
  0x3c   :  { %134 = vadd.xlane.f32.xlu1 %v1821_v38  ;;  %132 = vadd.xlane.f32.xlu0 %v1823_v39 }
  0x3d   :  { %1477 = vmatpush3.msra.mxu0 %v703_v36  ;;  %1557 = vmatpush3.msra.mxu1 %v687_v37  ;;  %v1981_v36 = vld [vmem:[#allocation2 + $0x188] sm:$0xff]  ;;  %v1987_v37 = vld [vmem:[#allocation2 + $0x198] sm:$0xff] }
  0x3e   :  { %1478 = vmatprep.subr.mxu0 %v702_v40  ;;  %1558 = vmatprep.subr.mxu1 %v686_v41  ;;  %2997 = vst [vmem:[#allocation12_spill] sm:$0xff] %v1987_v37 }
  0x3f   :  { %1479 = vmatpush3.msra.mxu0 %v702_v40  ;;  %1559 = vmatpush3.msra.mxu1 %v686_v41  ;;  %v1991_v40 = vld [vmem:[#allocation2 + $0x1a8] sm:$0xff]  ;;  %v1997_v41 = vld [vmem:[#allocation2 + $0x1b8] sm:$0xff] }
  0x40   :  { %1480 = vmatprep.subr.mxu0 %v701_v42  ;;  %1560 = vmatprep.subr.mxu1 %v685_v43  ;;  %2998 = vst [vmem:[#allocation13_spill] sm:$0xff] %v1991_v40  ;;  %2999 = vst [vmem:[#allocation14_spill] sm:$0xff] %v1997_v41 }
  0x41   :  { %138 = vadd.xlane.f32.xlu1 %v1827_v44  ;;  %136 = vadd.xlane.f32.xlu0 %v1829_v45 }
  0x42   :  { %1481 = vmatpush3.msra.mxu0 %v701_v42  ;;  %1561 = vmatpush3.msra.mxu1 %v685_v43  ;;  %v2001_v42 = vld [vmem:[#allocation2 + $0x1c8] sm:$0xff]  ;;  %v2007_v43 = vld [vmem:[#allocation2 + $0x1d8] sm:$0xff] }
  0x43   :  { %1482 = vmatprep.subr.mxu0 %v700_v46  ;;  %1562 = vmatprep.subr.mxu1 %v684_v47  ;;  %3000 = vst [vmem:[#allocation15_spill] sm:$0xff] %v2001_v42  ;;  %3001 = vst [vmem:[#allocation16_spill] sm:$0xff] %v2007_v43 }
  0x44   :  { %1483 = vmatpush3.msra.mxu0 %v700_v46  ;;  %1484 = vmatprep.mubr.f32.mxu0 %v1833_v48  ;;  %v2011_v46 = vld [vmem:[#allocation2 + $0x1e8] sm:$0xff] }
  0x45   :  { %1563 = vmatpush3.msra.mxu1 %v684_v47  ;;  %1564 = vmatprep.mubr.f32.mxu1 %v1787_v3  ;;  %3002 = vst [vmem:[#allocation17_spill] sm:$0xff] %v2011_v46  ;;  %v2017_v47 = vld [vmem:[#allocation2 + $0x1f8] sm:$0xff] }
  0x46   :  { %1485 = vmatmul.mubr.f32.vlgmr.msra.gmra.mxu0 %v1835_v49  ;;  %142 = vadd.xlane.f32.xlu1 %v1837_v50 }
  0x47   :  { %140 = vadd.xlane.f32.xlu0 %v1840_v51  ;;  %1565 = vmatmul.mubr.f32.vlgmr.msra.gmra.mxu1 %v1793_v9 }
  0x48   :  { %1487 = vmatprep.mubr.f32.mxu0 %v1843_v52  ;;  %1567 = vmatprep.mubr.f32.mxu1 %v1785_v2 }
  0x4a   :  { %1488 = vmatmul.mubr.f32.gmra.mxu0 %v1849_v53  ;;  %146 = vadd.xlane.f32.xlu1 %v1851_v54 }
  0x4b   :  { %144 = vadd.xlane.f32.xlu0 %v1855_v55  ;;  %1568 = vmatmul.mubr.f32.gmra.mxu1 %v1791_v8 }
  0x4c   :  { %1490 = vmatprep.mubr.f32.mxu0 %v1857_v56  ;;  %1570 = vmatprep.mubr.f32.mxu1 %v1799_v15 }
  0x4e   :  { %1491 = vmatmul.mubr.f32.gmra.mxu0 %v1863_v57  ;;  %150 = vadd.xlane.f32.xlu1 %v1865_v58 }
  0x4f   :  { %148 = vadd.xlane.f32.xlu0 %v1869_v59  ;;  %1571 = vmatmul.mubr.f32.gmra.mxu1 %v1797_v14 }
  0x50   :  { %1493 = vmatprep.mubr.f32.mxu0 %v1871_v60  ;;  %1573 = vmatprep.mubr.f32.mxu1 %v1805_v21 }
  0x52   :  { %1494 = vmatmul.mubr.f32.gmra.mxu0 %v1877_v61  ;;  %154 = vadd.xlane.f32.xlu1 %v1879_v62 }
  0x53   :  { %152 = vadd.xlane.f32.xlu0 %v1883_v63  ;;  %1574 = vmatmul.mubr.f32.gmra.mxu1 %v1803_v20 }
  0x54   :  { %1496 = vmatprep.mubr.f32.mxu0 %v1885_v0  ;;  %1576 = vmatprep.mubr.f32.mxu1 %v1811_v27 }
  0x56   :  { %1497 = vmatmul.mubr.f32.gmra.mxu0 %v1891_v1  ;;  %158 = vadd.xlane.f32.xlu1 %v1893_v4 }
  0x57   :  { %156 = vadd.xlane.f32.xlu0 %v1897_v5  ;;  %1577 = vmatmul.mubr.f32.gmra.mxu1 %v1809_v26 }
  0x58   :  { %1499 = vmatprep.mubr.f32.mxu0 %v1899_v6  ;;  %1579 = vmatprep.mubr.f32.mxu1 %v1817_v33 }
  0x5a   :  { %1500 = vmatmul.mubr.f32.gmra.mxu0 %v1905_v7  ;;  %162 = vadd.xlane.f32.xlu1 %v1907_v10 }
  0x5b   :  { %160 = vadd.xlane.f32.xlu0 %v1911_v11  ;;  %1580 = vmatmul.mubr.f32.gmra.mxu1 %v1815_v32 }
  0x5c   :  { %1502 = vmatprep.mubr.f32.mxu0 %v1913_v12  ;;  %1582 = vmatprep.mubr.f32.mxu1 %v1823_v39 }
  0x5e   :  { %1503 = vmatmul.mubr.f32.gmra.mxu0 %v1919_v13  ;;  %166 = vadd.xlane.f32.xlu1 %v1921_v16 }
  0x5f   :  { %164 = vadd.xlane.f32.xlu0 %v1925_v17  ;;  %1583 = vmatmul.mubr.f32.gmra.mxu1 %v1821_v38 }
  0x60   :  { %1505 = vmatprep.mubr.f32.mxu0 %v1927_v18  ;;  %1585 = vmatprep.mubr.f32.mxu1 %v1829_v45 }
  0x62   :  { %1506 = vmatmul.mubr.f32.gmra.mxu0 %v1933_v19  ;;  %170 = vadd.xlane.f32.xlu1 %v1935_v22 }
  0x63   :  { %168 = vadd.xlane.f32.xlu0 %v1939_v23  ;;  %1586 = vmatmul.mubr.f32.gmra.mxu1 %v1827_v44 }
  0x64   :  { %1508 = vmatprep.mubr.f32.mxu0 %v1941_v24  ;;  %1588 = vmatprep.mubr.f32.mxu1 %v1840_v51 }
  0x66   :  { %1509 = vmatmul.mubr.f32.gmra.mxu0 %v1947_v25  ;;  %174 = vadd.xlane.f32.xlu1 %v1835_v49 }
  0x67   :  { %172 = vadd.xlane.f32.xlu0 %v1833_v48  ;;  %1589 = vmatmul.mubr.f32.gmra.mxu1 %v1837_v50 }
  0x68   :  { %1511 = vmatprep.mubr.f32.mxu0 %v1951_v28  ;;  %1591 = vmatprep.mubr.f32.mxu1 %v1855_v55 }
  0x6a   :  { %1512 = vmatmul.mubr.f32.gmra.mxu0 %v1957_v29  ;;  %178 = vadd.xlane.f32.xlu1 %v1849_v53 }
  0x6b   :  { %176 = vadd.xlane.f32.xlu0 %v1843_v52  ;;  %1592 = vmatmul.mubr.f32.gmra.mxu1 %v1851_v54 }
  0x6c   :  { %1514 = vmatprep.mubr.f32.mxu0 %v1961_v30  ;;  %1594 = vmatprep.mubr.f32.mxu1 %v1869_v59 }
  0x6e   :  { %1515 = vmatmul.mubr.f32.gmra.mxu0 %v1967_v31  ;;  %182 = vadd.xlane.f32.xlu1 %v1863_v57 }
  0x6f   :  { %180 = vadd.xlane.f32.xlu0 %v1857_v56  ;;  %1595 = vmatmul.mubr.f32.gmra.mxu1 %v1865_v58 }
  0x70   :  { %1517 = vmatprep.mubr.f32.mxu0 %v1971_v34  ;;  %1597 = vmatprep.mubr.f32.mxu1 %v1883_v63 }
  0x72   :  { %1518 = vmatmul.mubr.f32.gmra.mxu0 %v1977_v35  ;;  %186 = vadd.xlane.f32.xlu1 %v1877_v61 }
  0x73   :  { %184 = vadd.xlane.f32.xlu0 %v1871_v60  ;;  %1598 = vmatmul.mubr.f32.gmra.mxu1 %v1879_v62 }
  0x74   :  { %1520 = vmatprep.mubr.f32.mxu0 %v1981_v36  ;;  %1600 = vmatprep.mubr.f32.mxu1 %v1897_v5 }
  0x76   :  { %1521 = vmatmul.mubr.f32.gmra.mxu0 %v1987_v37  ;;  %190 = vadd.xlane.f32.xlu1 %v1891_v1 }
  0x77   :  { %188 = vadd.xlane.f32.xlu0 %v1885_v0  ;;  %1601 = vmatmul.mubr.f32.gmra.mxu1 %v1893_v4 }
  0x78   :  { %1523 = vmatprep.mubr.f32.mxu0 %v1991_v40  ;;  %1603 = vmatprep.mubr.f32.mxu1 %v1911_v11 }
  0x7a   :  { %1524 = vmatmul.mubr.f32.gmra.mxu0 %v1997_v41  ;;  %194 = vadd.xlane.f32.xlu1 %v1905_v7 }
  0x7b   :  { %192 = vadd.xlane.f32.xlu0 %v1899_v6  ;;  %1604 = vmatmul.mubr.f32.gmra.mxu1 %v1907_v10 }
  0x7c   :  { %1526 = vmatprep.mubr.f32.mxu0 %v2001_v42  ;;  %1606 = vmatprep.mubr.f32.mxu1 %v1925_v17 }
  0x7e   :  { %1527 = vmatmul.mubr.f32.gmra.mxu0 %v2007_v43  ;;  %198 = vadd.xlane.f32.xlu1 %v1919_v13 }
  0x7f   :  { %196 = vadd.xlane.f32.xlu0 %v1913_v12  ;;  %1607 = vmatmul.mubr.f32.gmra.mxu1 %v1921_v16 }
  0x80   :  { %1529 = vmatprep.mubr.f32.mxu0 %v2011_v46  ;;  %1609 = vmatprep.mubr.f32.mxu1 %v1939_v23 }
  0x82   :  { %1530 = vmatmul.mubr.f32.gmra.mxu0 %v2017_v47  ;;  %202 = vadd.xlane.f32.xlu1 %v1933_v19 }
  0x83   :  { %200 = vadd.xlane.f32.xlu0 %v1927_v18  ;;  %1610 = vmatmul.mubr.f32.gmra.mxu1 %v1935_v22 }
  0x86   :  { %206 = vadd.xlane.f32.xlu1 %v1947_v25 }
  0x87   :  { %204 = vadd.xlane.f32.xlu0 %v1941_v24 }
  0x8a   :  { %210 = vadd.xlane.f32.xlu1 %v1957_v29 }
  0x8b   :  { %208 = vadd.xlane.f32.xlu0 %v1951_v28 }
  0x8e   :  { %214 = vadd.xlane.f32.xlu1 %v1967_v31 }
  0x8f   :  { %212 = vadd.xlane.f32.xlu0 %v1961_v30  ;;  %v269_v30 = vmul.f32 %v1793_v9, %v1793_v9  ;;  %v273_v9 = vmul.f32 %v1797_v14, %v1797_v14  ;;  %v277_v14 = vmul.f32 %v1809_v26, %v1809_v26  ;;  %v281_v26 = vmul.f32 %v1821_v38, %v1821_v38 }
  0x90   :  { %v285_v38 = vmul.f32 %v1837_v50, %v1837_v50 }
  0x92   :  { %218 = vadd.xlane.f32.xlu1 %v1977_v35 }
  0x93   :  { %216 = vadd.xlane.f32.xlu0 %v1971_v34 }
  0x96   :  { %222 = vadd.xlane.f32.xlu1 %v1987_v37  ;;  %v268_v37 = vmul.f32 %v1787_v3, %v1787_v3  ;;  %v272_v3 = vmul.f32 %v1799_v15, %v1799_v15  ;;  %v276_v15 = vmul.f32 %v1811_v27, %v1811_v27  ;;  %v280_v27 = vmul.f32 %v1823_v39, %v1823_v39 }
  0x97   :  { %220 = vadd.xlane.f32.xlu0 %v1981_v36  ;;  %v284_v39 = vmul.f32 %v1840_v51, %v1840_v51  ;;  %v289_v51 = vmul.f32 %v1865_v58, %v1865_v58  ;;  %v293_v58 = vmul.f32 %v1893_v4, %v1893_v4  ;;  %v297_v4 = vmul.f32 %v1921_v16, %v1921_v16 }
  0x98   :  { %v365_v16 = vmul.f32 %v1835_v49, %v1835_v49  ;;  %v369_v49 = vmul.f32 %v1863_v57, %v1863_v57 }
  0x9a   :  { %226 = vadd.xlane.f32.xlu1 %v1997_v41  ;;  %v271_v41 = vmul.f32 %v1791_v8, %v1791_v8  ;;  %v274_v8 = vmul.f32 %v1805_v21, %v1805_v21  ;;  %v278_v21 = vmul.f32 %v1817_v33, %v1817_v33  ;;  %v282_v33 = vmul.f32 %v1829_v45, %v1829_v45 }
  0x9b   :  { %224 = vadd.xlane.f32.xlu0 %v1991_v40  ;;  %v286_v45 = vmul.f32 %v1855_v55, %v1855_v55  ;;  %v290_v55 = vmul.f32 %v1883_v63, %v1883_v63 }
  0x9e   :  { %230 = vadd.xlane.f32.xlu1 %v2007_v43  ;;  %v270_v43 = vmul.f32 %v1785_v2, %v1785_v2  ;;  %v275_v2 = vmul.f32 %v1803_v20, %v1803_v20  ;;  %v279_v20 = vmul.f32 %v1815_v32, %v1815_v32  ;;  %v283_v32 = vmul.f32 %v1827_v44, %v1827_v44 }
  0x9f   :  { %228 = vadd.xlane.f32.xlu0 %v2001_v42  ;;  %v287_v44 = vmul.f32 %v1851_v54, %v1851_v54  ;;  %v291_v54 = vmul.f32 %v1879_v62, %v1879_v62  ;;  %v295_v62 = vmul.f32 %v1907_v10, %v1907_v10  ;;  %v299_v10 = vmul.f32 %v1935_v22, %v1935_v22 }
  0xa0   :  { %v367_v22 = vmul.f32 %v1849_v53, %v1849_v53  ;;  %v371_v53 = vmul.f32 %v1877_v61, %v1877_v61  ;;  %v372_v61 = vmul.f32 %v1885_v0, %v1885_v0 }
  0xa2   :  { %234 = vadd.xlane.f32.xlu1 %v2017_v47 }
  0xa3   :  { %232 = vadd.xlane.f32.xlu0 %v2011_v46 }
  0xa6   :  { %302 = vadd.xlane.f32.xlu1 %v269_v30  ;;  %v2049_v40 = vpop.xlane.xlu1 %112 }
  0xa7   :  { %300 = vadd.xlane.f32.xlu0 %v268_v37  ;;  %v2051_v42 = vpop.xlane.xlu0 %108 }
  0xaa   :  { %306 = vadd.xlane.f32.xlu1 %v271_v41 }
  0xab   :  { %304 = vadd.xlane.f32.xlu0 %v270_v43 }
  0xac   :  { %v2057_v30 = vpop.xlane.xlu1 %114  ;;  %v2059_v46 = vpop.xlane.xlu0 %110 }
  0xae   :  { %310 = vadd.xlane.f32.xlu1 %v273_v9 }
  0xaf   :  { %308 = vadd.xlane.f32.xlu0 %v272_v3 }
  0xb1   :  { %v2065_v37 = vpop.xlane.xlu1 %118  ;;  %v2067_v41 = vpop.xlane.xlu0 %116 }
  0xb2   :  { %314 = vadd.xlane.f32.xlu1 %v275_v2 }
  0xb3   :  { %312 = vadd.xlane.f32.xlu0 %v274_v8 }
  0xb6   :  { %318 = vadd.xlane.f32.xlu1 %v277_v14  ;;  %v2075_v43 = vpop.xlane.xlu1 %122  ;;  %v2077_v9 = vpop.xlane.xlu0 %120 }
  0xb7   :  { %316 = vadd.xlane.f32.xlu0 %v276_v15 }
  0xba   :  { %322 = vadd.xlane.f32.xlu1 %v279_v20 }
  0xbb   :  { %320 = vadd.xlane.f32.xlu0 %v278_v21  ;;  %v2085_v3 = vpop.xlane.xlu1 %126  ;;  %v2087_v2 = vpop.xlane.xlu0 %124 }
  0xbe   :  { %326 = vadd.xlane.f32.xlu1 %v281_v26  ;;  %v288_v26 = vmul.f32 %v1869_v59, %v1869_v59  ;;  %v292_v59 = vmul.f32 %v1897_v5, %v1897_v5 }
  0xbf   :  { %324 = vadd.xlane.f32.xlu0 %v280_v27 }
  0xc0   :  { %v2093_v8 = vpop.xlane.xlu1 %130  ;;  %v2095_v14 = vpop.xlane.xlu0 %128 }
  0xc2   :  { %330 = vadd.xlane.f32.xlu1 %v283_v32 }
  0xc3   :  { %328 = vadd.xlane.f32.xlu0 %v282_v33 }
  0xc5   :  { %v2101_v15 = vpop.xlane.xlu1 %134  ;;  %v2103_v20 = vpop.xlane.xlu0 %132 }
  0xc6   :  { %334 = vadd.xlane.f32.xlu1 %v285_v38 }
  0xc7   :  { %332 = vadd.xlane.f32.xlu0 %v284_v39  ;;  %v294_v39 = vmul.f32 %v1911_v11, %v1911_v11 }
  0xca   :  { %338 = vadd.xlane.f32.xlu1 %v287_v44  ;;  %v2109_v21 = vpop.xlane.xlu1 %138  ;;  %v2111_v50 = vpop.xlane.xlu0 %136 }
  0xcb   :  { %336 = vadd.xlane.f32.xlu0 %v286_v45  ;;  %v296_v45 = vmul.f32 %v1925_v17, %v1925_v17 }
  0xce   :  { %342 = vadd.xlane.f32.xlu1 %v289_v51 }
  0xcf   :  { %340 = vadd.xlane.f32.xlu0 %v288_v26  ;;  %v2119_v27 = vpop.xlane.xlu1 %142  ;;  %v298_v26 = vmul.f32 %v1939_v23, %v1939_v23 }
  0xd0   :  { %v2123_v32 = vpop.xlane.xlu0 %140 }
  0xd2   :  { %346 = vadd.xlane.f32.xlu1 %v291_v54 }
  0xd3   :  { %344 = vadd.xlane.f32.xlu0 %v290_v55  ;;  %v2127_v33 = vpop.xlane.xlu1 %146  ;;  %v364_v55 = vmul.f32 %v1833_v48, %v1833_v48 }
  0xd4   :  { %v2131_v38 = vpop.xlane.xlu0 %144 }
  0xd6   :  { %350 = vadd.xlane.f32.xlu1 %v293_v58 }
  0xd7   :  { %348 = vadd.xlane.f32.xlu0 %v292_v59  ;;  %v2135_v63 = vpop.xlane.xlu1 %150  ;;  %v366_v59 = vmul.f32 %v1843_v52, %v1843_v52 }
  0xd8   :  { %v2139_v44 = vpop.xlane.xlu0 %148 }
  0xda   :  { %354 = vadd.xlane.f32.xlu1 %v295_v62 }
  0xdb   :  { %352 = vadd.xlane.f32.xlu0 %v294_v39  ;;  %v2143_v5 = vpop.xlane.xlu1 %154  ;;  %v368_v39 = vmul.f32 %v1857_v56, %v1857_v56  ;;  %v373_v56 = vmul.f32 %v1891_v1, %v1891_v1  ;;  %v377_v1 = vmul.f32 %v1919_v13, %v1919_v13 }
  0xdc   :  { %v2147_v51 = vpop.xlane.xlu0 %152 }
  0xde   :  { %358 = vadd.xlane.f32.xlu1 %v297_v4 }
  0xdf   :  { %356 = vadd.xlane.f32.xlu0 %v296_v45  ;;  %v2151_v11 = vpop.xlane.xlu1 %158  ;;  %v370_v45 = vmul.f32 %v1871_v60, %v1871_v60  ;;  %v375_v60 = vmul.f32 %v1905_v7, %v1905_v7  ;;  %v379_v7 = vmul.f32 %v1933_v19, %v1933_v19 }
  0xe0   :  { %v2155_v54 = vpop.xlane.xlu0 %156 }
  0xe2   :  { %362 = vadd.xlane.f32.xlu1 %v299_v10 }
  0xe3   :  { %360 = vadd.xlane.f32.xlu0 %v298_v26  ;;  %v2159_v17 = vpop.xlane.xlu1 %162 }
  0xe4   :  { %v2163_v58 = vpop.xlane.xlu0 %160 }
  0xe6   :  { %398 = vadd.xlane.f32.xlu1 %v365_v16 }
  0xe7   :  { %396 = vadd.xlane.f32.xlu0 %v364_v55  ;;  %v2167_v23 = vpop.xlane.xlu1 %166  ;;  %v374_v55 = vmul.f32 %v1899_v6, %v1899_v6 }
  0xe8   :  { %v2171_v62 = vpop.xlane.xlu0 %164 }
  0xea   :  { %402 = vadd.xlane.f32.xlu1 %v367_v22 }
  0xeb   :  { %400 = vadd.xlane.f32.xlu0 %v366_v59  ;;  %v2175_v48 = vpop.xlane.xlu1 %170  ;;  %v376_v59 = vmul.f32 %v1913_v12, %v1913_v12  ;;  %v381_v12 = vmul.f32 %v1947_v25, %v1947_v25  ;;  %v382_v25 = vmul.f32 %v1951_v28, %v1951_v28 }
  0xec   :  { %v2179_v4 = vpop.xlane.xlu0 %168 }
  0xee   :  { %406 = vadd.xlane.f32.xlu1 %v369_v49 }
  0xef   :  { %404 = vadd.xlane.f32.xlu0 %v368_v39  ;;  %v175_v52 = vpop.xlane.xlu1 %174  ;;  %v378_v39 = vmul.f32 %v1927_v18, %v1927_v18 }
  0xf0   :  { %v2186_v10 = vadd.f32 %v175_v52, %v2059_v46  ;;  %v2188_v57 = vpop.xlane.xlu0 %172 }
  0xf2   :  { %410 = vadd.xlane.f32.xlu1 %v371_v53 }
  0xf3   :  { %408 = vadd.xlane.f32.xlu0 %v370_v45  ;;  %v2192_v26 = vpop.xlane.xlu1 %178  ;;  %v380_v45 = vmul.f32 %v1941_v24, %v1941_v24 }
  0xf4   :  { %v2196_v16 = vpop.xlane.xlu0 %176 }
  0xf6   :  { %414 = vadd.xlane.f32.xlu1 %v373_v56 }
  0xf7   :  { %412 = vadd.xlane.f32.xlu0 %v372_v61  ;;  %v2200_v46 = vpop.xlane.xlu1 %182 }
  0xf8   :  { %v2204_v22 = vpop.xlane.xlu0 %180 }
  0xfa   :  { %418 = vadd.xlane.f32.xlu1 %v375_v60 }
  0xfb   :  { %416 = vadd.xlane.f32.xlu0 %v374_v55  ;;  %v2208_v0 = vpop.xlane.xlu1 %186 }
  0xfc   :  { %v2212_v49 = vpop.xlane.xlu0 %184 }
  0xfe   :  { %422 = vadd.xlane.f32.xlu1 %v377_v1  ;;  %v3003_v1 = vld [vmem:[#allocation11_spill] sm:$0xff] }
  0xff   :  { %420 = vadd.xlane.f32.xlu0 %v376_v59  ;;  %v191_v6 = vpop.xlane.xlu1 %190 }
 0x100   :  { %v2219_v53 = vadd.f32 %v191_v6, %v2085_v3  ;;  %v2221_v13 = vpop.xlane.xlu0 %188  ;;  %v383_v3 = vmul.f32 %v1957_v29, %v1957_v29  ;;  %v384_v29 = vmul.f32 %v3003_v1, %v3003_v1  ;;  %v3008_v1 = vld [vmem:[#allocation15_spill] sm:$0xff] }
 0x102   :  { %426 = vadd.xlane.f32.xlu1 %v379_v7 }
 0x103   :  { %424 = vadd.xlane.f32.xlu0 %v378_v39  ;;  %v195_v52 = vpop.xlane.xlu1 %194 }
 0x104   :  { %v2228_v19 = vadd.f32 %v195_v52, %v2093_v8  ;;  %v193_v56 = vpop.xlane.xlu0 %192 }
 0x105   :  { %v2231_v18 = vadd.f32 %v193_v56, %v2095_v14  ;;  %v385_v14 = vmul.f32 %v1967_v31, %v1967_v31  ;;  %v386_v31 = vmul.f32 %v1971_v34, %v1971_v34 }
 0x106   :  { %430 = vadd.xlane.f32.xlu1 %v381_v12 }
 0x107   :  { %428 = vadd.xlane.f32.xlu0 %v380_v45  ;;  %v199_v61 = vpop.xlane.xlu1 %198 }
 0x108   :  { %v2238_v60 = vadd.f32 %v199_v61, %v2101_v15  ;;  %v197_v24 = vpop.xlane.xlu0 %196  ;;  %v387_v15 = vmul.f32 %v1977_v35, %v1977_v35  ;;  %v388_v35 = vmul.f32 %v1981_v36, %v1981_v36  ;;  %v3006_v61 = vld [vmem:[#allocation13_spill] sm:$0xff] }
 0x109   :  { %v2241_v8 = vadd.f32 %v197_v24, %v2103_v20 }
 0x10a   :  { %434 = vadd.xlane.f32.xlu1 %v383_v3 }
 0x10b   :  { %432 = vadd.xlane.f32.xlu0 %v382_v25  ;;  %v203_v55 = vpop.xlane.xlu1 %202  ;;  %v390_v25 = vmul.f32 %v3006_v61, %v3006_v61 }
 0x10c   :  { %v201_v59 = vpop.xlane.xlu0 %200  ;;  %v2248_v7 = vadd.f32 %v203_v55, %v2109_v21  ;;  %v3004_v21 = vld [vmem:[#allocation12_spill] sm:$0xff] }
 0x10d   :  { %v2251_v28 = vadd.f32 %v201_v59, %v2111_v50  ;;  %v389_v50 = vmul.f32 %v3004_v21, %v3004_v21 }
 0x10e   :  { %438 = vadd.xlane.f32.xlu1 %v385_v14 }
 0x10f   :  { %436 = vadd.xlane.f32.xlu0 %v384_v29  ;;  %v207_v20 = vpop.xlane.xlu1 %206  ;;  %v392_v29 = vmul.f32 %v3008_v1, %v3008_v1 }
 0x110   :  { %v2258_v6 = vadd.f32 %v207_v20, %v2119_v27  ;;  %v205_v39 = vpop.xlane.xlu0 %204  ;;  %v3005_v27 = vld [vmem:[#allocation14_spill] sm:$0xff] }
 0x111   :  { %v2261_v12 = vadd.f32 %v205_v39, %v2123_v32  ;;  %v391_v32 = vmul.f32 %v3005_v27, %v3005_v27 }
 0x112   :  { %442 = vadd.xlane.f32.xlu1 %v387_v15 }
 0x113   :  { %440 = vadd.xlane.f32.xlu0 %v386_v31  ;;  %v211_v52 = vpop.xlane.xlu1 %210  ;;  %v3009_v31 = vld [vmem:[#allocation17_spill] sm:$0xff] }
 0x114   :  { %v209_v45 = vpop.xlane.xlu0 %208  ;;  %v2268_v56 = vadd.f32 %v211_v52, %v2127_v33  ;;  %v3007_v33 = vld [vmem:[#allocation16_spill] sm:$0xff]  ;;  %v394_v39 = vmul.f32 %v3009_v31, %v3009_v31 }
 0x115   :  { %v2271_v34 = vadd.f32 %v209_v45, %v2131_v38  ;;  %v393_v38 = vmul.f32 %v3007_v33, %v3007_v33 }
 0x116   :  { %446 = vadd.xlane.f32.xlu1 %v389_v50 }
 0x117   :  { %444 = vadd.xlane.f32.xlu0 %v388_v35  ;;  %v215_v3 = vpop.xlane.xlu1 %214 }
 0x118   :  { %v2278_v24 = vadd.f32 %v215_v3, %v2135_v63  ;;  %v213_v36 = vpop.xlane.xlu0 %212 }
 0x119   :  { %v2281_v14 = vadd.f32 %v213_v36, %v2139_v44  ;;  %v395_v44 = vmul.f32 %v2017_v47, %v2017_v47 }
 0x11a   :  { %450 = vadd.xlane.f32.xlu1 %v391_v32 }
 0x11b   :  { %448 = vadd.xlane.f32.xlu0 %v390_v25  ;;  %v219_v55 = vpop.xlane.xlu1 %218 }
 0x11c   :  { %v217_v59 = vpop.xlane.xlu0 %216  ;;  %v2288_v15 = vadd.f32 %v219_v55, %v2143_v5 }
 0x11d   :  { %v2291_v63 = vadd.f32 %v217_v59, %v2147_v51 }
 0x11e   :  { %454 = vadd.xlane.f32.xlu1 %v393_v38 }
 0x11f   :  { %452 = vadd.xlane.f32.xlu0 %v392_v29  ;;  %v223_v20 = vpop.xlane.xlu1 %222 }
 0x120   :  { %v2298_v21 = vadd.f32 %v223_v20, %v2151_v11  ;;  %v221_v50 = vpop.xlane.xlu0 %220 }
 0x121   :  { %v2301_v52 = vadd.f32 %v221_v50, %v2155_v54 }
 0x122   :  { %458 = vadd.xlane.f32.xlu1 %v395_v44 }
 0x123   :  { %3010 = vst [vmem:[#allocation11_spill] sm:$0xff] %v2301_v52  ;;  %456 = vadd.xlane.f32.xlu0 %v394_v39  ;;  %v227_v5 = vpop.xlane.xlu1 %226 }
 0x124   :  { %v225_v51 = vpop.xlane.xlu0 %224  ;;  %v2304_v35 = vadd.f32 %v227_v5, %v2159_v17 }
 0x125   :  { %v2307_v47 = vadd.f32 %v225_v51, %v2163_v58 }
 0x126   :  { %3011 = vst [vmem:[#allocation12_spill] sm:$0xff] %v2304_v35 }
 0x127   :  { %3012 = vst [vmem:[#allocation14_spill] sm:$0xff] %v2307_v47  ;;  %v231_v45 = vpop.xlane.xlu1 %230  ;;  %v238_v47 = vadd.f32 %v2196_v16, %v2049_v40  ;;  %v2415_v40 = vld [vmem:[%s2976_s2] ss:$0 sm:$0xff] }
 0x128   :  { %v2310_v27 = vadd.f32 %v231_v45, %v2167_v23  ;;  %v229_v11 = vpop.xlane.xlu0 %228  ;;  %3035 = vst [vmem:[#allocation36_spill] sm:$0xff] %v2415_v40 }
 0x129   :  { %v2313_v32 = vadd.f32 %v229_v11, %v2171_v62 }
 0x12a   :  { %3013 = vst [vmem:[#allocation13_spill] sm:$0xff] %v2310_v27 }
 0x12b   :  { %3014 = vst [vmem:[#allocation16_spill] sm:$0xff] %v2313_v32  ;;  %v235_v54 = vpop.xlane.xlu1 %234 }
 0x12c   :  { %v233_v3 = vpop.xlane.xlu0 %232  ;;  %v2316_v61 = vadd.f32 %v235_v54, %v2175_v48  ;;  %v2337_v48 = vpop.f32.mrf.mxu0 }
 0x12d   :  { %v2319_v25 = vadd.f32 %v233_v3, %v2179_v4  ;;  %v2339_v4 = vpop.f32.mrf.mxu1 }
 0x12e   :  { %3015 = vst [vmem:[#allocation15_spill] sm:$0xff] %v2316_v61  ;;  %v2345_v59 = vpop.f32.mrf.mxu0 }
 0x12f   :  { %3016 = vst [vmem:[#allocation17_spill] sm:$0xff] %v2319_v25  ;;  %v2321_v17 = vpop.xlane.xlu1 %302  ;;  %v2347_v44 = vpop.f32.mrf.mxu1 }
 0x130   :  { %v2323_v58 = vpop.xlane.xlu0 %300  ;;  %v2353_v39 = vpop.f32.mrf.mxu0 }
 0x131   :  { %v2355_v50 = vpop.f32.mrf.mxu1 }
 0x132   :  { %v2361_v45 = vpop.f32.mrf.mxu0 }
 0x133   :  { %v2325_v36 = vpop.xlane.xlu1 %306  ;;  %v2363_v11 = vpop.f32.mrf.mxu1 }
 0x134   :  { %v2327_v23 = vpop.xlane.xlu0 %304  ;;  %v2369_v25 = vpop.f32.mrf.mxu0 }
 0x135   :  { %v2371_v61 = vpop.f32.mrf.mxu1 }
 0x137   :  { %v2329_v33 = vpop.xlane.xlu1 %310 }
 0x138   :  { %v2331_v62 = vpop.xlane.xlu0 %308 }
 0x139   :  { %3017 = vst [vmem:[#allocation18_spill] sm:$0xff] %v2331_v62 }
 0x13b   :  { %v2333_v38 = vpop.xlane.xlu1 %314 }
 0x13c   :  { %3018 = vst [vmem:[#allocation19_spill] sm:$0xff] %v2333_v38  ;;  %v2335_v55 = vpop.xlane.xlu0 %312 }
 0x13d   :  { %3019 = vst [vmem:[#allocation20_spill] sm:$0xff] %v2335_v55 }
 0x13f   :  { %v2341_v1 = vpop.xlane.xlu1 %318 }
 0x140   :  { %3020 = vst [vmem:[#allocation21_spill] sm:$0xff] %v2341_v1  ;;  %v2343_v29 = vpop.xlane.xlu0 %316 }
 0x141   :  { %3021 = vst [vmem:[#allocation22_spill] sm:$0xff] %v2343_v29 }
 0x143   :  { %v2349_v20 = vpop.xlane.xlu1 %322 }
 0x144   :  { %3022 = vst [vmem:[#allocation23_spill] sm:$0xff] %v2349_v20  ;;  %v2351_v31 = vpop.xlane.xlu0 %320 }
 0x145   :  { %3023 = vst [vmem:[#allocation24_spill] sm:$0xff] %v2351_v31  ;;  %v2377_v31 = vpop.f32.mrf.mxu0 }
 0x147   :  { %v2357_v5 = vpop.xlane.xlu1 %326  ;;  %v2385_v29 = vpop.f32.mrf.mxu0 }
 0x148   :  { %3024 = vst [vmem:[#allocation25_spill] sm:$0xff] %v2357_v5  ;;  %v2359_v51 = vpop.xlane.xlu0 %324  ;;  %v2379_v5 = vpop.f32.mrf.mxu1 }
 0x149   :  { %3025 = vst [vmem:[#allocation26_spill] sm:$0xff] %v2359_v51  ;;  %v2403_v35 = vpop.f32.mrf.mxu0 }
 0x14b   :  { %v2365_v54 = vpop.xlane.xlu1 %330 }
 0x14c   :  { %3026 = vst [vmem:[#allocation27_spill] sm:$0xff] %v2365_v54  ;;  %v2367_v3 = vpop.xlane.xlu0 %328  ;;  %v2387_v54 = vpop.f32.mrf.mxu1 }
 0x14d   :  { %3027 = vst [vmem:[#allocation28_spill] sm:$0xff] %v2367_v3  ;;  %v236_v3 = vadd.f32 %v2188_v57, %v2051_v42  ;;  %v493_v42 = vmul.f32 0.00390625, %v2186_v10  ;;  %v244_v10 = vadd.f32 %v2221_v13, %v2087_v2 }
 0x14e   :  { %v2405_v55 = vpop.f32.mrf.mxu1 }
 0x14f   :  { %v2373_v32 = vpop.xlane.xlu1 %334  ;;  %v492_v57 = vmul.f32 0.00390625, %v236_v3 }
 0x150   :  { %3028 = vst [vmem:[#allocation29_spill] sm:$0xff] %v2373_v32  ;;  %v2375_v27 = vpop.xlane.xlu0 %332 }
 0x151   :  { %3029 = vst [vmem:[#allocation30_spill] sm:$0xff] %v2375_v27  ;;  %v239_v27 = vadd.f32 %v2192_v26, %v2057_v30  ;;  %v243_v30 = vadd.f32 %v2208_v0, %v2075_v43  ;;  %v2423_v43 = vpop.f32.mrf.mxu0  ;;  %v2425_v0 = vpop.f32.mrf.mxu1 }
 0x153   :  { %v2381_v51 = vpop.xlane.xlu1 %338 }
 0x154   :  { %3030 = vst [vmem:[#allocation31_spill] sm:$0xff] %v2381_v51  ;;  %v2383_v20 = vpop.xlane.xlu0 %336  ;;  %v240_v51 = vadd.f32 %v2204_v22, %v2067_v41  ;;  %v242_v41 = vadd.f32 %v2212_v49, %v2077_v9  ;;  %v499_v9 = vmul.f32 0.00390625, %v243_v30  ;;  %v501_v30 = vmul.f32 0.00390625, %v2219_v53 }
 0x155   :  { %3031 = vst [vmem:[#allocation32_spill] sm:$0xff] %v2383_v20  ;;  %v241_v20 = vadd.f32 %v2200_v46, %v2065_v37  ;;  %v495_v37 = vmul.f32 0.00390625, %v239_v27  ;;  %v494_v46 = vmul.f32 0.00390625, %v238_v47  ;;  %v2432_v27 = vmul.f32 %v492_v57, %v492_v57 }
 0x156   :  { %v496_v3 = vmul.f32 0.00390625, %v240_v51  ;;  %v2437_v47 = vmul.f32 %v2415_v40, %v492_v57  ;;  %v2470_v53 = vmul.f32 %v2415_v40, %v499_v9 }
 0x157   :  { %v2391_v1 = vpop.xlane.xlu1 %342  ;;  %v497_v22 = vmul.f32 0.00390625, %v241_v20  ;;  %v2439_v2 = vmul.f32 %v495_v37, %v495_v37  ;;  %v2442_v13 = vmul.f32 %v2415_v40, %v495_v37  ;;  %v498_v20 = vmul.f32 0.00390625, %v242_v41  ;;  %v2460_v41 = vpop.f32.mrf.mxu0 }
 0x158   :  { %3032 = vst [vmem:[#allocation33_spill] sm:$0xff] %v2391_v1  ;;  %v2395_v32 = vpop.xlane.xlu0 %340  ;;  %v500_v1 = vmul.f32 0.00390625, %v244_v10  ;;  %v2457_v52 = vmul.f32 %v496_v3, %v496_v3  ;;  %v503_v37 = vmul.f32 0.00390625, %v2228_v19  ;;  %v2465_v38 = vmul.f32 %v2415_v40, %v496_v3 }
 0x159   :  { %3033 = vst [vmem:[#allocation34_spill] sm:$0xff] %v2395_v32  ;;  %v2430_v32 = vmul.f32 %v2415_v40, %v493_v42  ;;  %v2455_v57 = vmul.f32 %v2415_v40, %v497_v22  ;;  %v502_v10 = vmul.f32 0.00390625, %v2231_v18  ;;  %v2478_v19 = vmul.f32 %v2415_v40, %v498_v20 }
 0x15a   :  { %3040 = vst [vmem:[#allocation41_spill] sm:$0xff] %v2457_v52  ;;  %3041 = vst [vmem:[#allocation42_spill] sm:$0xff] %v2465_v38  ;;  %v2482_v52 = vadd.f32 %v2339_v4, %v2337_v48  ;;  %v505_v3 = vmul.f32 0.00390625, %v2238_v60  ;;  %v2492_v18 = vmul.f32 %v500_v1, %v500_v1  ;;  %v2501_v48 = vmul.f32 %v503_v37, %v503_v37 }
 0x15b   :  { %v2410_v26 = vpop.xlane.xlu1 %346  ;;  %3044 = vst [vmem:[#allocation45_spill] sm:$0xff] %v2478_v19  ;;  %v2504_v60 = vmul.f32 %v2415_v40, %v503_v37  ;;  %v504_v4 = vmul.f32 0.00390625, %v2241_v8 }
 0x15c   :  { %3034 = vst [vmem:[#allocation35_spill] sm:$0xff] %v2410_v26  ;;  %v2419_v16 = vpop.xlane.xlu0 %344  ;;  %v2427_v26 = vmul.f32 %v493_v42, %v493_v42  ;;  %v2449_v42 = vmul.f32 %v2415_v40, %v494_v46  ;;  %3047 = vst [vmem:[#allocation48_spill] sm:$0xff] %v2492_v18  ;;  %v2510_v18 = vmul.f32 %v2415_v40, %v502_v10 }
 0x15d   :  { %3036 = vst [vmem:[#allocation37_spill] sm:$0xff] %v2419_v16  ;;  %v2446_v16 = vmul.f32 %v494_v46, %v494_v46  ;;  %v2467_v46 = vmul.f32 %v499_v9, %v499_v9  ;;  %v2490_v9 = vmul.f32 %v2415_v40, %v501_v30  ;;  %3048 = vst [vmem:[#allocation49_spill] sm:$0xff] %v2501_v48 }
 0x15e   :  { %v2524_v37 = vmul.f32 %v505_v3, %v505_v3  ;;  %v2540_v8 = vmul.f32 %v504_v4, %v504_v4 }
 0x15f   :  { %v2434_v49 = vpop.xlane.xlu1 %350  ;;  %3042 = vst [vmem:[#allocation43_spill] sm:$0xff] %v2467_v46  ;;  %v2487_v46 = vmul.f32 %v501_v30, %v501_v30  ;;  %v2507_v30 = vmul.f32 %v502_v10, %v502_v10  ;;  %v506_v10 = vmul.f32 0.00390625, %v2251_v28  ;;  %v508_v28 = vmul.f32 0.00390625, %v2261_v12 }
 0x160   :  { %3037 = vst [vmem:[#allocation38_spill] sm:$0xff] %v2434_v49  ;;  %v2444_v51 = vpop.xlane.xlu0 %348  ;;  %v2452_v49 = vmul.f32 %v497_v22, %v497_v22 }
 0x161   :  { %3038 = vst [vmem:[#allocation39_spill] sm:$0xff] %v2444_v51  ;;  %v2462_v51 = vpop.f32.mrf.mxu1  ;;  %3046 = vst [vmem:[#allocation47_spill] sm:$0xff] %v2487_v46 }
 0x162   :  { %3039 = vst [vmem:[#allocation40_spill] sm:$0xff] %v2452_v49  ;;  %v2475_v49 = vmul.f32 %v498_v20, %v498_v20  ;;  %v2499_v20 = vmul.f32 %v2415_v40, %v500_v1  ;;  %3049 = vst [vmem:[#allocation50_spill] sm:$0xff] %v2507_v30  ;;  %v2518_v1 = vadd.f32 %v2363_v11, %v2361_v45  ;;  %v507_v30 = vmul.f32 0.00390625, %v2248_v7 }
 0x163   :  { %v2473_v22 = vpop.xlane.xlu1 %354  ;;  %v1581_v46 = vpop.f32.mrf.mxu1  ;;  %v2537_v45 = vadd.f32 %v2371_v61, %v2369_v25  ;;  %v509_v11 = vmul.f32 0.00390625, %v2258_v6  ;;  %v2543_v7 = vmul.f32 %v2415_v40, %v504_v4  ;;  %v2556_v6 = vadd.f32 %v2387_v54, %v2385_v29 }
 0x164   :  { %3043 = vst [vmem:[#allocation44_spill] sm:$0xff] %v2473_v22  ;;  %v2485_v62 = vpop.xlane.xlu0 %352  ;;  %v2496_v22 = vadd.f32 %v2347_v44, %v2345_v59  ;;  %v2514_v59 = vadd.f32 %v2355_v50, %v2353_v39  ;;  %v2531_v39 = vmul.f32 %v2415_v40, %v505_v3  ;;  %v2548_v3 = vadd.f32 %v2379_v5, %v2377_v31 }
 0x165   :  { %3045 = vst [vmem:[#allocation46_spill] sm:$0xff] %v2485_v62  ;;  %v1501_v62 = vpop.f32.mrf.mxu0  ;;  %v2560_v25 = vadd.f32 %v2405_v55, %v2403_v35  ;;  %v2564_v31 = vmul.f32 %v507_v30, %v507_v30  ;;  %v2567_v5 = vmul.f32 %v2415_v40, %v507_v30  ;;  %v2569_v4 = vmul.f32 %v506_v10, %v506_v10 }
 0x166   :  { %v511_v50 = vmul.f32 0.00390625, %v2268_v56  ;;  %v2575_v29 = vmul.f32 %v2415_v40, %v506_v10  ;;  %v2579_v55 = vmul.f32 %v509_v11, %v509_v11  ;;  %v510_v54 = vmul.f32 0.00390625, %v2271_v34 }
 0x167   :  { %v2520_v44 = vpop.xlane.xlu1 %358  ;;  %3053 = vst [vmem:[#allocation54_spill] sm:$0xff] %v2564_v31  ;;  %3054 = vst [vmem:[#allocation55_spill] sm:$0xff] %v2569_v4  ;;  %v2585_v30 = vmul.f32 %v508_v28, %v508_v28  ;;  %v2594_v35 = vmul.f32 %v2415_v40, %v508_v28  ;;  %v512_v56 = vmul.f32 0.00390625, %v2281_v14 }
 0x168   :  { %3050 = vst [vmem:[#allocation51_spill] sm:$0xff] %v2520_v44  ;;  %v2528_v48 = vpop.xlane.xlu0 %356  ;;  %v1057_v44 = vpop.f32.mrf.mxu1  ;;  %3056 = vst [vmem:[#allocation57_spill] sm:$0xff] %v2575_v29  ;;  %v2601_v31 = vmul.f32 %v511_v50, %v511_v50  ;;  %v2610_v38 = vmul.f32 %v2415_v40, %v511_v50  ;;  %v2612_v34 = vmul.f32 %v510_v54, %v510_v54 }
 0x169   :  { %3051 = vst [vmem:[#allocation52_spill] sm:$0xff] %v2528_v48  ;;  %v832_v48 = vpop.f32.mrf.mxu0  ;;  %3057 = vst [vmem:[#allocation58_spill] sm:$0xff] %v2579_v55 }
 0x16a   :  { %3059 = vst [vmem:[#allocation60_spill] sm:$0xff] %v2585_v30  ;;  %v1584_v4 = vpop.f32.mrf.mxu1  ;;  %v513_v30 = vmul.f32 0.00390625, %v2278_v24  ;;  %3060 = vst [vmem:[#allocation61_spill] sm:$0xff] %v2601_v31  ;;  %v2618_v31 = vmul.f32 %v2415_v40, %v510_v54 }
 0x16b   :  { %v2562_v12 = vpop.xlane.xlu1 %362  ;;  %v1504_v10 = vpop.f32.mrf.mxu0 }
 0x16c   :  { %3052 = vst [vmem:[#allocation53_spill] sm:$0xff] %v2562_v12  ;;  %v2572_v61 = vpop.xlane.xlu0 %360  ;;  %v2583_v12 = vmul.f32 %v2415_v40, %v509_v11  ;;  %v2614_v11 = vadd.f32 %v1581_v46, %v1501_v62  ;;  %v2624_v19 = vmul.f32 %v513_v30, %v513_v30  ;;  %v2627_v50 = vmul.f32 %v2415_v40, %v513_v30 }
 0x16d   :  { %3055 = vst [vmem:[#allocation56_spill] sm:$0xff] %v2572_v61  ;;  %v2591_v61 = vadd.f32 %v2425_v0, %v2423_v43  ;;  %v2606_v43 = vadd.f32 %v2462_v51, %v2460_v41  ;;  %v2622_v51 = vadd.f32 %v1057_v44, %v832_v48  ;;  %v842_v41 = vpop.f32.mrf.mxu0  ;;  %v515_v62 = vmul.f32 0.00390625, %v2288_v15 }
 0x16e   :  { %3058 = vst [vmem:[#allocation59_spill] sm:$0xff] %v2583_v12  ;;  %3061 = vst [vmem:[#allocation62_spill] sm:$0xff] %v2624_v19  ;;  %v3094_v12 = vld [vmem:[#allocation49_spill] sm:$0xff] }
 0x16f   :  { %v399_v55 = vpop.xlane.xlu1 %398  ;;  %3062 = vst [vmem:[#allocation63_spill] sm:$0xff] %v2627_v50  ;;  %v514_v50 = vmul.f32 0.00390625, %v2291_v63 }
 0x170   :  { %v461_v0 = vadd.f32 %v399_v55, %v2321_v17  ;;  %v397_v28 = vpop.xlane.xlu0 %396  ;;  %v1067_v17 = vpop.f32.mrf.mxu1 }
 0x171   :  { %v460_v24 = vadd.f32 %v397_v28, %v2323_v58  ;;  %v2630_v28 = vmul.f32 %v512_v56, %v512_v56 }
 0x172   :  { %v525_v55 = vmul.f32 0.00390625, %v461_v0  ;;  %v2637_v0 = vmul.f32 %v2415_v40, %v512_v56  ;;  %v2648_v56 = vadd.f32 %v1584_v4, %v1504_v10  ;;  %v3067_v4 = vld [vmem:[#allocation18_spill] sm:$0xff] }
 0x173   :  { %v524_v46 = vmul.f32 0.00390625, %v460_v24  ;;  %v403_v58 = vpop.xlane.xlu1 %402  ;;  %3063 = vst [vmem:[#allocation64_spill] sm:$0xff] %v2630_v28  ;;  %v1507_v28 = vpop.f32.mrf.mxu0 }
 0x174   :  { %v589_v48 = vsub.f32 %v525_v55, %v2427_v26  ;;  %v463_v44 = vadd.f32 %v403_v58, %v2325_v36  ;;  %v401_v14 = vpop.xlane.xlu0 %400  ;;  %3064 = vst [vmem:[#allocation65_spill] sm:$0xff] %v2637_v0  ;;  %v1587_v26 = vpop.f32.mrf.mxu1  ;;  %v2646_v58 = vmul.f32 %v515_v62, %v515_v62 }
 0x175   :  { %v588_v15 = vsub.f32 %v524_v46, %v2432_v27  ;;  %v462_v24 = vadd.f32 %v401_v14, %v2327_v23  ;;  %v2651_v27 = vmul.f32 0.00390625, %v2298_v21  ;;  %v2656_v46 = vmul.f32 %v2415_v40, %v515_v62  ;;  %v852_v21 = vpop.f32.mrf.mxu0 }
 0x176   :  { %v621_v55 = vadd.f32 1e-05, %v589_v48  ;;  %v527_v36 = vmul.f32 0.00390625, %v463_v44  ;;  %v2660_v44 = vmul.f32 %v514_v50, %v514_v50 }
 0x177   :  { %v620_v0 = vadd.f32 1e-05, %v588_v15  ;;  %v526_v19 = vmul.f32 0.00390625, %v462_v24  ;;  %v407_v30 = vpop.xlane.xlu1 %406  ;;  %3065 = vst [vmem:[#allocation66_spill] sm:$0xff] %v2651_v27  ;;  %3066 = vst [vmem:[#allocation67_spill] sm:$0xff] %v2656_v46  ;;  %v2662_v15 = vadd.f32 %v1067_v17, %v842_v41  ;;  %v1077_v24 = vpop.f32.mrf.mxu1  ;;  %v3071_v17 = vld [vmem:[#allocation19_spill] sm:$0xff] }
 0x178   :  { %1617 = vrsqrt.f32 %v621_v55  ;;  %v591_v63 = vsub.f32 %v527_v36, %v2439_v2  ;;  %v465_v23 = vadd.f32 %v407_v30, %v2329_v33  ;;  %v405_v14 = vpop.xlane.xlu0 %404  ;;  %v2665_v2 = vmul.f32 %v2415_v40, %v514_v50  ;;  %v3074_v50 = vld [vmem:[#allocation41_spill] sm:$0xff]  ;;  %v3075_v33 = vld [vmem:[#allocation20_spill] sm:$0xff] }
 0x179   :  { %1619 = vrsqrt.f32 %v620_v0  ;;  %v590_v48 = vsub.f32 %v526_v19, %v2446_v16  ;;  %v464_v10 = vadd.f32 %v405_v14, %v3067_v4  ;;  %v2671_v16 = vmul.f32 %v2651_v27, %v2651_v27  ;;  %v3070_v19 = vld [vmem:[#allocation40_spill] sm:$0xff]  ;;  %v1510_v27 = vpop.f32.mrf.mxu0 }
 0x17a   :  { %v623_v55 = vadd.f32 1e-05, %v591_v63  ;;  %v529_v54 = vmul.f32 0.00390625, %v465_v23  ;;  %3068 = vst [vmem:[#allocation18_spill] sm:$0xff] %v2665_v2  ;;  %v3072_v23 = vld [vmem:[#allocation11_spill] sm:$0xff]  ;;  %v2682_v40 = vadd.f32 %v1587_v26, %v1507_v28  ;;  %v3081_v28 = vld [vmem:[#allocation21_spill] sm:$0xff] }
 0x17b   :  { %v622_v62 = vadd.f32 1e-05, %v590_v48  ;;  %v528_v0 = vmul.f32 0.00390625, %v464_v10  ;;  %v411_v30 = vpop.xlane.xlu1 %410  ;;  %3069 = vst [vmem:[#allocation68_spill] sm:$0xff] %v2671_v16  ;;  %v2676_v14 = vmul.f32 0.00390625, %v3072_v23 }
 0x17c   :  { %1621 = vrsqrt.f32 %v623_v55  ;;  %v593_v41 = vsub.f32 %v529_v54, %v3070_v19  ;;  %v467_v36 = vadd.f32 %v411_v30, %v3071_v17  ;;  %v409_v63 = vpop.xlane.xlu0 %408  ;;  %v1590_v55 = vpop.f32.mrf.mxu1  ;;  %v3076_v19 = vld [vmem:[#allocation12_spill] sm:$0xff]  ;;  %v2687_v17 = vadd.f32 %v1077_v24, %v852_v21 }
 0x17d   :  { %3073 = vst [vmem:[#allocation40_spill] sm:$0xff] %v2676_v14  ;;  %1623 = vrsqrt.f32 %v622_v62  ;;  %v592_v4 = vsub.f32 %v528_v0, %v3074_v50  ;;  %v466_v48 = vadd.f32 %v409_v63, %v3075_v33  ;;  %v2685_v30 = vmul.f32 0.00390625, %v3076_v19  ;;  %v3078_v0 = vld [vmem:[#allocation14_spill] sm:$0xff]  ;;  %v3080_v33 = vld [vmem:[#allocation43_spill] sm:$0xff] }
 0x17e   :  { %v625_v2 = vadd.f32 1e-05, %v593_v41  ;;  %v531_v54 = vmul.f32 0.00390625, %v467_v36  ;;  %v2690_v50 = vmul.f32 0.00390625, %v3078_v0  ;;  %v2694_v16 = vadd.f32 %v1590_v55, %v1510_v27  ;;  %v3083_v36 = vld [vmem:[#allocation22_spill] sm:$0xff] }
 0x17f   :  { %3077 = vst [vmem:[#allocation19_spill] sm:$0xff] %v2685_v30  ;;  %v624_v23 = vadd.f32 1e-05, %v592_v4  ;;  %v530_v62 = vmul.f32 0.00390625, %v466_v48  ;;  %v415_v46 = vpop.xlane.xlu1 %414  ;;  %v2700_v24 = vmul.f32 %v2676_v14, %v2676_v14  ;;  %v1087_v48 = vpop.f32.mrf.mxu1  ;;  %v2706_v27 = vmul.f32 %v2685_v30, %v2685_v30  ;;  %v3090_v4 = vld [vmem:[#allocation24_spill] sm:$0xff]  ;;  %v3091_v30 = vld [vmem:[#allocation13_spill] sm:$0xff] }
 0x180   :  { %3079 = vst [vmem:[#allocation11_spill] sm:$0xff] %v2690_v50  ;;  %1625 = vrsqrt.f32 %v625_v2  ;;  %v595_v63 = vsub.f32 %v531_v54, %v3080_v33  ;;  %v469_v26 = vadd.f32 %v415_v46, %v3081_v28  ;;  %v413_v10 = vpop.xlane.xlu0 %412  ;;  %3082 = vst [vmem:[#allocation41_spill] sm:$0xff] %v2694_v16  ;;  %v862_v2 = vpop.f32.mrf.mxu0  ;;  %v3088_v33 = vld [vmem:[#allocation23_spill] sm:$0xff] }
 0x181   :  { %1627 = vrsqrt.f32 %v624_v23  ;;  %v594_v41 = vsub.f32 %v530_v62, %v2475_v49  ;;  %v468_v21 = vadd.f32 %v413_v10, %v3083_v36  ;;  %3084 = vst [vmem:[#allocation20_spill] sm:$0xff] %v2700_v24  ;;  %3085 = vst [vmem:[#allocation12_spill] sm:$0xff] %v2706_v27  ;;  %v2712_v23 = vmul.f32 %v2690_v50, %v2690_v50  ;;  %v3087_v62 = vld [vmem:[#allocation47_spill] sm:$0xff]  ;;  %v3095_v24 = vld [vmem:[#allocation25_spill] sm:$0xff] }
 0x182   :  { %v627_v54 = vadd.f32 1e-05, %v595_v63  ;;  %v533_v19 = vmul.f32 0.00390625, %v469_v26  ;;  %v2731_v27 = vadd.f32 %v1087_v48, %v862_v2  ;;  %v3096_v2 = vld [vmem:[#allocation50_spill] sm:$0xff] }
 0x183   :  { %v626_v46 = vadd.f32 1e-05, %v594_v41  ;;  %v532_v10 = vmul.f32 0.00390625, %v468_v21  ;;  %v419_v55 = vpop.xlane.xlu1 %418  ;;  %3086 = vst [vmem:[#allocation14_spill] sm:$0xff] %v2712_v23  ;;  %v2721_v41 = vld [vmem:[%s2976_s2 + $0x1] ss:$0 sm:$0xff] }
 0x184   :  { %1629 = vrsqrt.f32 %v627_v54  ;;  %v597_v0 = vsub.f32 %v533_v19, %v3087_v62  ;;  %v471_v63 = vadd.f32 %v419_v55, %v3088_v33  ;;  %v417_v28 = vpop.xlane.xlu0 %416  ;;  %v3089_v21 = vld [vmem:[#allocation48_spill] sm:$0xff]  ;;  %v2726_v19 = vmul.f32 0.00390625, %v3091_v30  ;;  %v1513_v55 = vpop.f32.mrf.mxu0 }
 0x185   :  { %v1618_v26 = vpop.eup %1617  ;;  %1631 = vrsqrt.f32 %v626_v46  ;;  %v596_v49 = vsub.f32 %v532_v10, %v3089_v21  ;;  %v470_v50 = vadd.f32 %v417_v28, %v3090_v4  ;;  %v1593_v62 = vpop.f32.mrf.mxu1  ;;  %v3092_v33 = vsub.f32 %v2482_v52, %v2430_v32 }
 0x186   :  { %v1620_v54 = vpop.eup %1619  ;;  %v629_v14 = vadd.f32 1e-05, %v597_v0  ;;  %v535_v23 = vmul.f32 0.00390625, %v471_v63  ;;  %v3093_v46 = vsub.f32 %v2496_v22, %v2437_v47  ;;  %v3097_v63 = vld [vmem:[#allocation26_spill] sm:$0xff] }
 0x187   :  { %v1237_v36 = vmul.f32 %v1618_v26, %v3092_v33  ;;  %v628_v21 = vadd.f32 1e-05, %v596_v49  ;;  %v534_v4 = vmul.f32 0.00390625, %v470_v50  ;;  %v423_v28 = vpop.xlane.xlu1 %422  ;;  %v2744_v50 = vmul.f32 %v2726_v19, %v2726_v19  ;;  %v872_v49 = vpop.f32.mrf.mxu0 }
 0x188   :  { %v1236_v10 = vmul.f32 %v1620_v54, %v3093_v46  ;;  %1633 = vrsqrt.f32 %v629_v14  ;;  %v599_v16 = vsub.f32 %v535_v23, %v3094_v12  ;;  %v473_v29 = vadd.f32 %v423_v28, %v3095_v24  ;;  %v421_v52 = vpop.xlane.xlu0 %420  ;;  %v1097_v14 = vpop.f32.mrf.mxu1 }
 0x189   :  { %v1273_v30 = vadd.f32 %v2721_v41, %v1237_v36  ;;  %v1622_v32 = vpop.eup %1621  ;;  %1635 = vrsqrt.f32 %v628_v21  ;;  %v598_v48 = vsub.f32 %v534_v4, %v3096_v2  ;;  %v472_v47 = vadd.f32 %v421_v52, %v3097_v63  ;;  %v3099_v36 = vld [vmem:[#allocation16_spill] sm:$0xff] }
 0x18a   :  { %v1272_v0 = vadd.f32 %v2721_v41, %v1236_v10  ;;  %v1624_v22 = vpop.eup %1623  ;;  %v3098_v12 = vsub.f32 %v2514_v59, %v2442_v13  ;;  %v631_v23 = vadd.f32 1e-05, %v599_v16  ;;  %v537_v26 = vmul.f32 0.00390625, %v473_v29  ;;  %v3101_v13 = vld [vmem:[#allocation27_spill] sm:$0xff]  ;;  %v2765_v63 = vpop.f32.mrf.mxu1 }
 0x18b   :  { %1305 = vst [vmem:[#allocation7 + $0x8] sm:$0xff] %v1273_v30  ;;  %v2750_v54 = vmul.f32 0.00390625, %v3099_v36  ;;  %v3100_v33 = vsub.f32 %v2518_v1, %v2449_v42  ;;  %v630_v10 = vadd.f32 1e-05, %v598_v48  ;;  %v536_v21 = vmul.f32 0.00390625, %v472_v47  ;;  %v427_v4 = vpop.xlane.xlu1 %426  ;;  %v2763_v48 = vpop.f32.mrf.mxu0 }
 0x18c   :  { %v1239_v24 = vmul.f32 %v1622_v32, %v3098_v12  ;;  %1304 = vst [vmem:[#allocation7] sm:$0xff] %v1272_v0  ;;  %1637 = vrsqrt.f32 %v631_v23  ;;  %v601_v30 = vsub.f32 %v537_v26, %v2524_v37  ;;  %v475_v59 = vadd.f32 %v427_v4, %v3101_v13  ;;  %v425_v16 = vpop.xlane.xlu0 %424  ;;  %v3102_v0 = vld [vmem:[#allocation28_spill] sm:$0xff] }
 0x18d   :  { %v1238_v46 = vmul.f32 %v1624_v22, %v3100_v33  ;;  %v1626_v29 = vpop.eup %1625  ;;  %1639 = vrsqrt.f32 %v630_v10  ;;  %v600_v32 = vsub.f32 %v536_v21, %v2540_v8  ;;  %v474_v42 = vadd.f32 %v425_v16, %v3102_v0  ;;  %v3104_v8 = vld [vmem:[#allocation42_spill] sm:$0xff] }
 0x18e   :  { %v1275_v28 = vadd.f32 %v2721_v41, %v1239_v24  ;;  %v1628_v1 = vpop.eup %1627  ;;  %v1220_v2 = vsub.f32 %v2731_v27, %v2594_v35  ;;  %v3103_v37 = vsub.f32 %v2537_v45, %v2455_v57  ;;  %v633_v22 = vadd.f32 1e-05, %v601_v30  ;;  %v3106_v21 = vld [vmem:[#allocation54_spill] sm:$0xff] }
 0x18f   :  { %v1274_v52 = vadd.f32 %v2721_v41, %v1238_v46  ;;  %v539_v12 = vmul.f32 0.00390625, %v475_v59  ;;  %v2770_v24 = vadd.f32 %v1593_v62, %v1513_v55  ;;  %v3105_v23 = vsub.f32 %v2548_v3, %v3104_v8  ;;  %v431_v46 = vpop.xlane.xlu1 %430  ;;  %v3108_v62 = vld [vmem:[#allocation55_spill] sm:$0xff]  ;;  %v3109_v59 = vld [vmem:[#allocation30_spill] sm:$0xff] }
 0x190   :  { %1307 = vst [vmem:[#allocation7 + $0x18] sm:$0xff] %v1275_v28  ;;  %v1241_v47 = vmul.f32 %v1626_v29, %v3103_v37  ;;  %v632_v36 = vadd.f32 1e-05, %v600_v32  ;;  %v538_v33 = vmul.f32 0.00390625, %v474_v42  ;;  %1641 = vrsqrt.f32 %v633_v22  ;;  %v3107_v28 = vld [vmem:[#allocation29_spill] sm:$0xff]  ;;  %v429_v45 = vpop.xlane.xlu0 %428  ;;  %v2787_v32 = vpop.f32.mrf.mxu1 }
 0x191   :  { %1306 = vst [vmem:[#allocation7 + $0x10] sm:$0xff] %v1274_v52  ;;  %v1240_v26 = vmul.f32 %v1628_v1, %v3105_v23  ;;  %v603_v4 = vsub.f32 %v539_v12, %v3106_v21  ;;  %v477_v57 = vadd.f32 %v431_v46, %v3107_v28  ;;  %v1630_v30 = vpop.eup %1629  ;;  %v476_v3 = vadd.f32 %v429_v45, %v3109_v59  ;;  %v2785_v52 = vpop.f32.mrf.mxu0  ;;  %v3111_v22 = vld [vmem:[#allocation45_spill] sm:$0xff]  ;;  %v3113_v46 = vld [vmem:[#allocation58_spill] sm:$0xff]  ;;  %v3114_v21 = vld [vmem:[#allocation31_spill] sm:$0xff] }
 0x192   :  { %v1277_v10 = vadd.f32 %v2721_v41, %v1241_v47  ;;  %1643 = vrsqrt.f32 %v632_v36  ;;  %v602_v13 = vsub.f32 %v538_v33, %v3108_v62  ;;  %v1632_v16 = vpop.eup %1631  ;;  %v2783_v29 = vmul.f32 %v2750_v54, %v2750_v54  ;;  %v2807_v62 = vpop.f32.mrf.mxu1 }
 0x193   :  { %v1276_v55 = vadd.f32 %v2721_v41, %v1240_v26  ;;  %v3110_v0 = vsub.f32 %v2556_v6, %v2470_v53  ;;  %v635_v1 = vadd.f32 1e-05, %v603_v4  ;;  %v541_v37 = vmul.f32 0.00390625, %v477_v57  ;;  %v435_v36 = vpop.xlane.xlu1 %434  ;;  %v3116_v57 = vld [vmem:[#allocation32_spill] sm:$0xff] }
 0x194   :  { %1309 = vst [vmem:[#allocation7 + $0x28] sm:$0xff] %v1277_v10  ;;  %v2792_v47 = vadd.f32 %v1097_v14, %v872_v49  ;;  %v3112_v12 = vsub.f32 %v2560_v25, %v3111_v22  ;;  %v634_v23 = vadd.f32 1e-05, %v602_v13  ;;  %v540_v26 = vmul.f32 0.00390625, %v476_v3  ;;  %v433_v6 = vpop.xlane.xlu0 %432  ;;  %v3115_v14 = vld [vmem:[#allocation60_spill] sm:$0xff] }
 0x195   :  { %v1243_v42 = vmul.f32 %v1630_v30, %v3110_v0  ;;  %1308 = vst [vmem:[#allocation7 + $0x20] sm:$0xff] %v1276_v55  ;;  %1645 = vrsqrt.f32 %v635_v1  ;;  %v605_v10 = vsub.f32 %v541_v37, %v3113_v46  ;;  %v479_v53 = vadd.f32 %v435_v36, %v3114_v21  ;;  %v1634_v4 = vpop.eup %1633  ;;  %v2805_v55 = vpop.f32.mrf.mxu0  ;;  %v3118_v0 = vld [vmem:[#allocation15_spill] sm:$0xff] }
 0x196   :  { %v1242_v8 = vmul.f32 %v1632_v16, %v3112_v12  ;;  %1647 = vrsqrt.f32 %v634_v23  ;;  %v604_v28 = vsub.f32 %v540_v26, %v3115_v14  ;;  %v478_v25 = vadd.f32 %v433_v6, %v3116_v57  ;;  %v1636_v45 = vpop.eup %1635  ;;  %v3120_v26 = vld [vmem:[#allocation61_spill] sm:$0xff]  ;;  %v2829_v14 = vpop.f32.mrf.mxu1 }
 0x197   :  { %v1279_v33 = vadd.f32 %v2721_v41, %v1243_v42  ;;  %v1223_v30 = vsub.f32 %v2770_v24, %v2610_v38  ;;  %v3117_v13 = vsub.f32 %v2591_v61, %v2490_v9  ;;  %v637_v3 = vadd.f32 1e-05, %v605_v10  ;;  %v3121_v9 = vld [vmem:[#allocation33_spill] sm:$0xff] }
 0x198   :  { %v1278_v49 = vadd.f32 %v2721_v41, %v1242_v8  ;;  %v543_v16 = vmul.f32 0.00390625, %v479_v53  ;;  %v2813_v42 = vmul.f32 0.00390625, %v3118_v0  ;;  %v3119_v1 = vsub.f32 %v2606_v43, %v2499_v20  ;;  %v439_v8 = vpop.xlane.xlu1 %438  ;;  %v3122_v53 = vld [vmem:[#allocation34_spill] sm:$0xff]  ;;  %v3123_v6 = vld [vmem:[#allocation17_spill] sm:$0xff] }
 0x199   :  { %1311 = vst [vmem:[#allocation7 + $0x38] sm:$0xff] %v1279_v33  ;;  %v1245_v59 = vmul.f32 %v1634_v4, %v3117_v13  ;;  %v636_v22 = vadd.f32 1e-05, %v604_v28  ;;  %v542_v12 = vmul.f32 0.00390625, %v478_v25  ;;  %1649 = vrsqrt.f32 %v637_v3  ;;  %v437_v33 = vpop.xlane.xlu0 %436  ;;  %v1638_v46 = vpop.eup %1637  ;;  %v3150_v38 = vld [vmem:[#allocation53_spill] sm:$0xff] }
 0x19a   :  { %1310 = vst [vmem:[#allocation7 + $0x30] sm:$0xff] %v1278_v49  ;;  %v1244_v37 = vmul.f32 %v1636_v45, %v3119_v1  ;;  %v607_v36 = vsub.f32 %v543_v16, %v3120_v26  ;;  %v481_v61 = vadd.f32 %v439_v8, %v3121_v9  ;;  %v480_v20 = vadd.f32 %v437_v33, %v3122_v53  ;;  %v1640_v43 = vpop.eup %1639  ;;  %v2827_v49 = vpop.f32.mrf.mxu0  ;;  %v3128_v26 = vld [vmem:[#allocation64_spill] sm:$0xff]  ;;  %v3129_v9 = vld [vmem:[#allocation37_spill] sm:$0xff] }
 0x19b   :  { %v1281_v23 = vadd.f32 %v2721_v41, %v1245_v59  ;;  %1651 = vrsqrt.f32 %v636_v22  ;;  %v606_v21 = vsub.f32 %v542_v12, %v2612_v34  ;;  %v2825_v4 = vmul.f32 0.00390625, %v3123_v6 }
 0x19c   :  { %v1280_v10 = vadd.f32 %v2721_v41, %v1244_v37  ;;  %v3124_v28 = vsub.f32 %v2614_v11, %v2504_v60  ;;  %v639_v25 = vadd.f32 1e-05, %v607_v36  ;;  %v545_v45 = vmul.f32 0.00390625, %v481_v61  ;;  %v443_v0 = vpop.xlane.xlu1 %442  ;;  %v3126_v37 = vld [vmem:[#allocation62_spill] sm:$0xff]  ;;  %v3127_v60 = vld [vmem:[#allocation35_spill] sm:$0xff]  ;;  %v2849_v33 = vpop.f32.mrf.mxu0 }
 0x19d   :  { %1313 = vst [vmem:[#allocation7 + $0x48] sm:$0xff] %v1281_v23  ;;  %v1222_v34 = vsub.f32 %v2792_v47, %v2618_v31  ;;  %v3125_v13 = vsub.f32 %v2622_v51, %v2510_v18  ;;  %v638_v3 = vadd.f32 1e-05, %v606_v21  ;;  %v544_v16 = vmul.f32 0.00390625, %v480_v20  ;;  %v441_v12 = vpop.xlane.xlu0 %440  ;;  %v1642_v8 = vpop.eup %1641 }
 0x19e   :  { %v1247_v57 = vmul.f32 %v1638_v46, %v3124_v28  ;;  %1312 = vst [vmem:[#allocation7 + $0x40] sm:$0xff] %v1280_v10  ;;  %1653 = vrsqrt.f32 %v639_v25  ;;  %v609_v22 = vsub.f32 %v545_v45, %v3126_v37  ;;  %v483_v11 = vadd.f32 %v443_v0, %v3127_v60  ;;  %v2851_v46 = vpop.f32.mrf.mxu1  ;;  %v3133_v0 = vld [vmem:[#allocation39_spill] sm:$0xff]  ;;  %v2873_v37 = vpop.f32.mrf.mxu0 }
 0x19f   :  { %v1246_v59 = vmul.f32 %v1640_v43, %v3125_v13  ;;  %1655 = vrsqrt.f32 %v638_v3  ;;  %v608_v36 = vsub.f32 %v544_v16, %v3128_v26  ;;  %v482_v18 = vadd.f32 %v441_v12, %v3129_v9  ;;  %v1644_v51 = vpop.eup %1643 }
 0x1a0   :  { %v1283_v1 = vadd.f32 %v2721_v41, %v1247_v57  ;;  %v2847_v61 = vadd.f32 %v2765_v63, %v2763_v48  ;;  %v3130_v10 = vsub.f32 %v2648_v56, %v2531_v39  ;;  %v641_v53 = vadd.f32 1e-05, %v609_v22  ;;  %v447_v57 = vpop.xlane.xlu1 %446  ;;  %v3132_v56 = vld [vmem:[#allocation38_spill] sm:$0xff]  ;;  %v2875_v22 = vpop.f32.mrf.mxu1 }
 0x1a1   :  { %v1282_v23 = vadd.f32 %v2721_v41, %v1246_v59  ;;  %v547_v20 = vmul.f32 0.00390625, %v483_v11  ;;  %v2858_v43 = vmul.f32 %v2813_v42, %v2813_v42  ;;  %v3131_v48 = vsub.f32 %v2662_v15, %v2543_v7  ;;  %v445_v13 = vpop.xlane.xlu0 %444 }
 0x1a2   :  { %1315 = vst [vmem:[#allocation7 + $0x58] sm:$0xff] %v1283_v1  ;;  %v1249_v21 = vmul.f32 %v1642_v8, %v3130_v10  ;;  %v640_v6 = vadd.f32 1e-05, %v608_v36  ;;  %v546_v28 = vmul.f32 0.00390625, %v482_v18  ;;  %1657 = vrsqrt.f32 %v641_v53  ;;  %v1646_v59 = vpop.eup %1645  ;;  %v3135_v8 = vld [vmem:[#allocation57_spill] sm:$0xff]  ;;  %v3137_v10 = vld [vmem:[#allocation68_spill] sm:$0xff] }
 0x1a3   :  { %1314 = vst [vmem:[#allocation7 + $0x50] sm:$0xff] %v1282_v23  ;;  %v1248_v63 = vmul.f32 %v1644_v51, %v3131_v48  ;;  %v611_v39 = vsub.f32 %v547_v20, %v2646_v58  ;;  %v485_v45 = vadd.f32 %v447_v57, %v3132_v56  ;;  %v484_v7 = vadd.f32 %v445_v13, %v3133_v0  ;;  %v1648_v15 = vpop.eup %1647  ;;  %v3142_v56 = vld [vmem:[#allocation41_spill] sm:$0xff] }
 0x1a4   :  { %v1285_v25 = vadd.f32 %v2721_v41, %v1249_v21  ;;  %1659 = vrsqrt.f32 %v640_v6  ;;  %v610_v16 = vsub.f32 %v546_v28, %v2660_v44  ;;  %v2871_v1 = vmul.f32 %v2825_v4, %v2825_v4  ;;  %v451_v18 = vpop.xlane.xlu1 %450  ;;  %v3141_v28 = vld [vmem:[#allocation63_spill] sm:$0xff]  ;;  %v3145_v0 = vld [vmem:[#allocation65_spill] sm:$0xff] }
 0x1a5   :  { %v1284_v3 = vadd.f32 %v2721_v41, %v1248_v63  ;;  %v3134_v58 = vsub.f32 %v2682_v40, %v2567_v5  ;;  %v643_v11 = vadd.f32 1e-05, %v611_v39  ;;  %v549_v12 = vmul.f32 0.00390625, %v485_v45  ;;  %v3138_v5 = vld [vmem:[#allocation44_spill] sm:$0xff]  ;;  %v449_v53 = vpop.xlane.xlu0 %448  ;;  %v3140_v63 = vld [vmem:[#allocation46_spill] sm:$0xff]  ;;  %v2897_v39 = vpop.f32.mrf.mxu1  ;;  %v3143_v45 = vld [vmem:[#allocation59_spill] sm:$0xff] }
 0x1a6   :  { %1317 = vst [vmem:[#allocation7 + $0x68] sm:$0xff] %v1285_v25  ;;  %v2882_v44 = vadd.f32 %v2787_v32, %v2785_v52  ;;  %v3136_v23 = vsub.f32 %v2687_v17, %v3135_v8  ;;  %v642_v36 = vadd.f32 1e-05, %v610_v16  ;;  %v548_v9 = vmul.f32 0.00390625, %v484_v7  ;;  %v1650_v20 = vpop.eup %1649  ;;  %v3139_v32 = vld [vmem:[#allocation20_spill] sm:$0xff]  ;;  %v2895_v25 = vpop.f32.mrf.mxu0 }
 0x1a7   :  { %v1251_v60 = vmul.f32 %v1646_v59, %v3134_v58  ;;  %1316 = vst [vmem:[#allocation7 + $0x60] sm:$0xff] %v1284_v3  ;;  %1661 = vrsqrt.f32 %v643_v11  ;;  %v613_v40 = vsub.f32 %v549_v12, %v3137_v10  ;;  %v487_v21 = vadd.f32 %v451_v18, %v3138_v5  ;;  %v3146_v12 = vld [vmem:[#allocation12_spill] sm:$0xff]  ;;  %v1137_v5 = vpop.f32.mrf.mxu1 }
 0x1a8   :  { %v1250_v26 = vmul.f32 %v1648_v15, %v3136_v23  ;;  %1663 = vrsqrt.f32 %v642_v36  ;;  %v612_v48 = vsub.f32 %v548_v9, %v3139_v32  ;;  %v486_v17 = vadd.f32 %v449_v53, %v3140_v63  ;;  %v1652_v6 = vpop.eup %1651  ;;  %v3147_v23 = vld [vmem:[#allocation51_spill] sm:$0xff]  ;;  %v3149_v10 = vld [vmem:[#allocation52_spill] sm:$0xff] }
 0x1a9   :  { %v1287_v51 = vadd.f32 %v2721_v41, %v1251_v60  ;;  %v1225_v57 = vsub.f32 %v2847_v61, %v3141_v28  ;;  %v3144_v13 = vsub.f32 %v3142_v56, %v3143_v45  ;;  %v645_v3 = vadd.f32 1e-05, %v613_v40  ;;  %v455_v60 = vpop.xlane.xlu1 %454  ;;  %v453_v36 = vpop.xlane.xlu0 %452 }
 0x1aa   :  { %v1286_v52 = vadd.f32 %v2721_v41, %v1250_v26  ;;  %v551_v16 = vmul.f32 0.00390625, %v487_v21  ;;  %v1224_v7 = vsub.f32 %v2882_v44, %v3145_v0  ;;  %v1252_v15 = vmul.f32 %v1652_v6, %v1220_v2  ;;  %v3148_v44 = vld [vmem:[#allocation14_spill] sm:$0xff]  ;;  %v912_v40 = vpop.f32.mrf.mxu0 }
 0x1ab   :  { %1319 = vst [vmem:[#allocation7 + $0x78] sm:$0xff] %v1287_v51  ;;  %v1253_v59 = vmul.f32 %v1650_v20, %v3144_v13  ;;  %v644_v61 = vadd.f32 1e-05, %v612_v48  ;;  %v550_v58 = vmul.f32 0.00390625, %v486_v17  ;;  %1665 = vrsqrt.f32 %v645_v3  ;;  %v1654_v9 = vpop.eup %1653  ;;  %v1608_v13 = vpop.f32.mrf.mxu1 }
 0x1ac   :  { %1318 = vst [vmem:[#allocation7 + $0x70] sm:$0xff] %v1286_v52  ;;  %v615_v8 = vsub.f32 %v551_v16, %v3146_v12  ;;  %v489_v26 = vadd.f32 %v455_v60, %v3147_v23  ;;  %v1288_v18 = vadd.f32 %v2721_v41, %v1252_v15  ;;  %v488_v35 = vadd.f32 %v453_v36, %v3149_v10  ;;  %v1656_v27 = vpop.eup %1655  ;;  %v1528_v45 = vpop.f32.mrf.mxu0  ;;  %v3153_v16 = vld [vmem:[#allocation18_spill] sm:$0xff]  ;;  %v3155_v36 = vld [vmem:[#allocation36_spill] sm:$0xff] }
 0x1ad   :  { %v1289_v11 = vadd.f32 %v2721_v41, %v1253_v59  ;;  %1667 = vrsqrt.f32 %v644_v61  ;;  %v614_v51 = vsub.f32 %v550_v58, %v3148_v44  ;;  %v1123_v2 = vadd.f32 %v2807_v62, %v2805_v55  ;;  %v459_v55 = vpop.xlane.xlu1 %458 }
 0x1ae   :  { %v1255_v21 = vmul.f32 %v1654_v9, %v1223_v30  ;;  %v647_v53 = vadd.f32 1e-05, %v615_v8  ;;  %v553_v20 = vmul.f32 0.00390625, %v489_v26  ;;  %v1118_v52 = vadd.f32 %v2829_v14, %v2827_v49  ;;  %1320 = vst [vmem:[#allocation7 + $0x80] sm:$0xff] %v1288_v18  ;;  %v457_v30 = vpop.xlane.xlu0 %456  ;;  %v3151_v14 = vld [vmem:[#allocation56_spill] sm:$0xff]  ;;  %v3154_v26 = vld [vmem:[#allocation66_spill] sm:$0xff]  ;;  %v922_v18 = vpop.f32.mrf.mxu0 }
 0x1af   :  { %1321 = vst [vmem:[#allocation7 + $0x88] sm:$0xff] %v1289_v11  ;;  %v1254_v32 = vmul.f32 %v1656_v27, %v1222_v34  ;;  %v646_v48 = vadd.f32 1e-05, %v614_v51  ;;  %v552_v63 = vmul.f32 0.00390625, %v488_v35  ;;  %v491_v24 = vadd.f32 %v459_v55, %v3150_v38  ;;  %v1658_v6 = vpop.eup %1657  ;;  %v3152_v34 = vld [vmem:[#allocation67_spill] sm:$0xff]  ;;  %v3156_v51 = vld [vmem:[#allocation40_spill] sm:$0xff] }
 0x1b0   :  { %v1291_v62 = vadd.f32 %v2721_v41, %v1255_v21  ;;  %1669 = vrsqrt.f32 %v647_v53  ;;  %v617_v17 = vsub.f32 %v553_v20, %v2744_v50  ;;  %v490_v31 = vadd.f32 %v457_v30, %v3151_v14 }
 0x1b1   :  { %v1290_v28 = vadd.f32 %v2721_v41, %v1254_v32  ;;  %1671 = vrsqrt.f32 %v646_v48  ;;  %v616_v49 = vsub.f32 %v552_v63, %v2783_v29  ;;  %v1660_v47 = vpop.eup %1659  ;;  %v1227_v56 = vsub.f32 %v1123_v2, %v3152_v34  ;;  %v1531_v48 = vpop.f32.mrf.mxu0 }
 0x1b2   :  { %1323 = vst [vmem:[#allocation7 + $0x98] sm:$0xff] %v1291_v62  ;;  %v1257_v59 = vmul.f32 %v1658_v6, %v1225_v57  ;;  %v649_v3 = vadd.f32 1e-05, %v617_v17  ;;  %v555_v50 = vmul.f32 0.00390625, %v491_v24  ;;  %v1226_v0 = vsub.f32 %v1118_v52, %v3153_v16  ;;  %v3157_v52 = vld [vmem:[#allocation19_spill] sm:$0xff] }
 0x1b3   :  { %1322 = vst [vmem:[#allocation7 + $0x90] sm:$0xff] %v1290_v28  ;;  %v1256_v15 = vmul.f32 %v1660_v47, %v1224_v7  ;;  %v648_v61 = vadd.f32 1e-05, %v616_v49  ;;  %v554_v58 = vmul.f32 0.00390625, %v490_v31  ;;  %v1133_v29 = vadd.f32 %v2851_v46, %v2849_v33  ;;  %v1147_v33 = vpop.f32.mrf.mxu1  ;;  %v3158_v62 = vld [vmem:[#allocation11_spill] sm:$0xff]  ;;  %v932_v14 = vpop.f32.mrf.mxu0 }
 0x1b4   :  { %v1293_v60 = vadd.f32 %v2721_v41, %v1257_v59  ;;  %1673 = vrsqrt.f32 %v649_v3  ;;  %v619_v11 = vsub.f32 %v555_v50, %v2858_v43  ;;  %v1662_v12 = vpop.eup %1661  ;;  %v1128_v57 = vadd.f32 %v2875_v22, %v2873_v37 }
 0x1b5   :  { %v1292_v8 = vadd.f32 %v2721_v41, %v1256_v15  ;;  %1675 = vrsqrt.f32 %v648_v61  ;;  %v618_v23 = vsub.f32 %v554_v58, %v2871_v1  ;;  %v1664_v7 = vpop.eup %1663  ;;  %v1197_v9 = vmul.f32 %v3155_v36, %v3154_v26  ;;  %v1611_v63 = vpop.f32.mrf.mxu1 }
 0x1b6   :  { %1325 = vst [vmem:[#allocation7 + $0xa8] sm:$0xff] %v1293_v60  ;;  %v1259_v46 = vmul.f32 %v1662_v12, %v1227_v56  ;;  %v651_v44 = vadd.f32 1e-05, %v619_v11  ;;  %v1196_v43 = vmul.f32 %v3155_v36, %v3156_v51  ;;  %v1258_v10 = vmul.f32 %v1664_v7, %v1226_v0 }
 0x1b7   :  { %1324 = vst [vmem:[#allocation7 + $0xa0] sm:$0xff] %v1292_v8  ;;  %v650_v37 = vadd.f32 1e-05, %v618_v23  ;;  %v1229_v22 = vsub.f32 %v1133_v29, %v1197_v9  ;;  %v1143_v35 = vadd.f32 %v2897_v39, %v2895_v25  ;;  %v1138_v21 = vadd.f32 %v1137_v5, %v912_v40  ;;  %v1157_v31 = vpop.f32.mrf.mxu1 }
 0x1b8   :  { %v1295_v1 = vadd.f32 %v2721_v41, %v1259_v46  ;;  %1677 = vrsqrt.f32 %v651_v44  ;;  %v1666_v27 = vpop.eup %1665  ;;  %v1228_v2 = vsub.f32 %v1128_v57, %v1196_v43  ;;  %v1294_v53 = vadd.f32 %v2721_v41, %v1258_v10 }
 0x1b9   :  { %1679 = vrsqrt.f32 %v650_v37  ;;  %v1199_v32 = vmul.f32 %v3155_v36, %v3157_v52  ;;  %v1261_v55 = vmul.f32 %v1666_v27, %v1229_v22  ;;  %v1198_v25 = vmul.f32 %v3155_v36, %v3158_v62 }
 0x1ba   :  { %v1668_v20 = vpop.eup %1667  ;;  %1327 = vst [vmem:[#allocation7 + $0xb8] sm:$0xff] %v1295_v1  ;;  %1326 = vst [vmem:[#allocation7 + $0xb0] sm:$0xff] %v1294_v53  ;;  %v1153_v38 = vadd.f32 %v1608_v13, %v1528_v45  ;;  %v1148_v30 = vadd.f32 %v1147_v33, %v922_v18  ;;  %v1201_v49 = vmul.f32 %v3155_v36, %v2726_v19  ;;  %v1681_v19 = vld [vmem:[%s2976_s2] ss:$0 sm:$0xff]  ;;  %s1341_s2 = sshll.u32 %s1752_s28, 4  ;;  %s1342_s2 = int_to_ptr.vmem [resolvable:$true] %s1341_s2 }
 0x1bb   :  { %v1260_v39 = vmul.f32 %v1668_v20, %v1228_v2  ;;  %v1231_v17 = vsub.f32 %v1143_v35, %v1199_v32  ;;  %v1297_v40 = vadd.f32 %v2721_v41, %v1261_v55  ;;  %v1230_v24 = vsub.f32 %v1138_v21, %v1198_v25  ;;  %s1722_s29 = scalar_lea.vmem %s1342_s2, 4096  ;;  %p1727_p11 = scmp.lt.s32.totalorder %s1342_s2, %s1342_s2 }
 0x1bc   :  { %v1200_v34 = vmul.f32 %v3155_v36, %v2750_v54  ;;  %v1233_v45 = vsub.f32 %v1153_v38, %v1201_v49  ;;  %v1163_v13 = vadd.f32 %v1611_v63, %v1531_v48  ;;  %v1158_v16 = vadd.f32 %v1157_v31, %v932_v14  ;;  %p1723_p10 = scmp.ne.s32.totalorder %s1342_s2, %s1722_s29  ;;  %p1728_p12 = scmp.lt.s32.totalorder %s1722_s29, %s1722_s29 }
 0x1bd   :  { %v1670_v5 = vpop.eup %1669  ;;  %v1296_v6 = vadd.f32 %v2721_v41, %v1260_v39  ;;  %1329 = vst [vmem:[#allocation7 + $0xc8] sm:$0xff] %v1297_v40  ;;  %v1203_v61 = vmul.f32 %v1681_v19, %v2813_v42  ;;  %v1202_v58 = vmul.f32 %v1681_v19, %v2825_v4 }
 0x1be   :  { %v1672_v28 = vpop.eup %1671  ;;  %v1263_v47 = vmul.f32 %v1670_v5, %v1231_v17  ;;  %v1232_v50 = vsub.f32 %v1148_v30, %v1200_v34  ;;  %p1729_p13 = por %p1728_p12, %p1727_p11 }
 0x1bf   :  { %1328 = vst [vmem:[#allocation7 + $0xc0] sm:$0xff] %v1296_v6  ;;  %v1262_v56 = vmul.f32 %v1672_v28, %v1230_v24  ;;  %v1235_v60 = vsub.f32 %v1163_v13, %v1203_v61  ;;  %v1234_v57 = vsub.f32 %v1158_v16, %v1202_v58 }
 0x1c0   :  { %v1299_v59 = vadd.f32 %v2721_v41, %v1263_v47  ;;  %p1730_p0 = pnand %p1729_p13, %p1723_p10 }
 0x1c1   :  { %v1674_v3 = vpop.eup %1673  ;;  %v1298_v0 = vadd.f32 %v2721_v41, %v1262_v56 }
 0x1c2   :  { %v1676_v15 = vpop.eup %1675  ;;  %1331 = vst [vmem:[#allocation7 + $0xd8] sm:$0xff] %v1299_v59  ;;  %v1265_v54 = vmul.f32 %v1674_v3, %v1233_v45 }
 0x1c3   :  { %1330 = vst [vmem:[#allocation7 + $0xd0] sm:$0xff] %v1298_v0  ;;  %v1264_v29 = vmul.f32 %v1676_v15, %v1232_v50 }
 0x1c4   :  { %v1301_v11 = vadd.f32 %v2721_v41, %v1265_v54 }
 0x1c5   :  { %v1678_v12 = vpop.eup %1677  ;;  %v1300_v8 = vadd.f32 %v2721_v41, %v1264_v29 }
 0x1c6   :  { %v1680_v23 = vpop.eup %1679  ;;  %1333 = vst [vmem:[#allocation7 + $0xe8] sm:$0xff] %v1301_v11  ;;  %v1267_v7 = vmul.f32 %v1678_v12, %v1235_v60 }
 0x1c7   :  { %1332 = vst [vmem:[#allocation7 + $0xe0] sm:$0xff] %v1300_v8  ;;  %v1266_v42 = vmul.f32 %v1680_v23, %v1234_v57 }
 0x1c8   :  { %v1303_v26 = vadd.f32 %v2721_v41, %v1267_v7 }
 0x1c9   :  { %v1302_v4 = vadd.f32 %v2721_v41, %v1266_v42 }
 0x1ca   :  { %1335 = vst [vmem:[#allocation7 + $0xf8] sm:$0xff] %v1303_v26 }
 0x1cb   :  { %1334 = vst [vmem:[#allocation7 + $0xf0] sm:$0xff] %v1302_v4 }
 0x1cc   :  { %1733 = shalt.err (!%p1730_p0)
}
 0x1cd   :  { %1347 = dma.vmem_to_hbm [thread:$0]  %s1342_s2, 4096, %s2977_s3, [#allocation4], %s1749_s15, %s1749_s15, %s1750_s16  }
 0x1ce   :  { %1746 = dma.done.wait [#allocation4], 4096  }
 0x1cf   :  { %1747 = vsyncadd [#allocation4], 4294963200 }
 0x1d0   :  { %1351 = vsyncpa [#allocation3], 1 }
 0x1d1   :  { %1352 = vsyncpa [#allocation6], 1 }
 0x1d2   :  { %1353 = vsyncpa [#allocation4], 1 }

</bundles_post_ra>
